<compile_context>
chip_gen: v7x
topology: tpu7x:2x2x1
jax: 0.10.0
libtpu: 0.0.40
codegen_flags: <defaults>
</compile_context>

<pallas_src>
import functools

import jax
import jax.numpy as jnp
import numpy as np
from jax import lax
from jax.experimental import pallas as pl
from jax.experimental.pallas import tpu as pltpu


OUT_W = 128  # lane-dense fused-head output width (>= n_disc + n_cont + 1)


# ----------------------------------------------------------------------------
# Pallas kernels
# ----------------------------------------------------------------------------
def _matmul_bias_relu_kernel(x_ref, w_ref, b_ref, o_ref):
    """o = relu(x @ w + b): bf16 operands on the MXU, f32 accumulate/epilogue."""
    y = jnp.dot(x_ref[...], w_ref[...], preferred_element_type=jnp.float32)
    y = jnp.maximum(y + b_ref[...], 0.0)
    o_ref[...] = y.astype(o_ref.dtype)


def pallas_conv_matmul(patches, w, b):
    """patches:(M,K) bf16 @ w:(K,O) bf16 + b:(O,) f32 -> bf16 activations.

    Shapes here are tiny (M <= 128, K <= 640), so the whole tile lives in VMEM
    with grid=().  # TODO(synk): for large batches switch to a 1-D row grid
    (multiples of 8 rows) with dimension_semantics=("parallel",) to shard
    across v7x's 2 TensorCores and respect its 64 MiB VMEM.
    """
    M = patches.shape[0]
    O = w.shape[1]
    return pl.pallas_call(
        _matmul_bias_relu_kernel,
        out_shape=jax.ShapeDtypeStruct((M, O), jnp.bfloat16),
        in_specs=[pl.BlockSpec(memory_space=pltpu.MemorySpace.VMEM)] * 3,
        out_specs=pl.BlockSpec(memory_space=pltpu.MemorySpace.VMEM),
    )(patches, w, b.reshape(1, O).astype(jnp.float32))


def _fused_head_kernel(x_ref, w1_ref, b1_ref, w2_ref, b2_ref, mask_ref, o_ref,
                       *, n_disc, n_cont):
    """Both dense heads fused into one kernel:
         h = relu(x @ [d1_w | k1_w] + [d1_b | k1_b])          (M, 1024)
         y = h @ W2 + b2   (W2 block-diagonal, 128-lane wide) (M, OUT_W)
       then, on the same tile: masked softmax over the discrete columns,
       tanh over the continuous columns, and argmax of the masked logits.
       Output slab (M, OUT_W) f32:
         cols [0:n_disc]              -> q_values (CategoricalMasked probs)
         cols [n_disc:n_disc+n_cont]  -> tanh continuous params
         col  [n_disc+n_cont]         -> argmax index (as f32)
    """
    x = x_ref[...]
    h = jnp.dot(x, w1_ref[...], preferred_element_type=jnp.float32) + b1_ref[...]
    h = jnp.maximum(h, 0.0)
    y = jnp.dot(h.astype(jnp.bfloat16), w2_ref[...],
                preferred_element_type=jnp.float32) + b2_ref[...]

    col = lax.broadcasted_iota(jnp.int32, y.shape, 1)
    is_disc = col < n_disc
    is_cont = jnp.logical_and(col >= n_disc, col < n_disc + n_cont)
    is_best = col == (n_disc + n_cont)

    # CategoricalMasked(logits, mask).probs == softmax over masked logits.
    # Precondition: every row has at least one mask entry set (otherwise the
    # result is a uniform distribution over the discrete actions).
    valid = jnp.logical_and(is_disc, mask_ref[...] > 0.5)
    masked = jnp.where(valid, y, jnp.full_like(y, -1e9))
    m = jnp.max(masked, axis=-1, keepdims=True)
    e = jnp.where(is_disc, jnp.exp(masked - m), 0.0)
    s = jnp.sum(e, axis=-1, keepdims=True)
    probs = e * pl.reciprocal(s, approx=True)          # EUP reciprocal (free slot)

    # argmax(probs) == argmax(masked logits); first index wins ties.
    cand = jnp.where(masked >= m, col, jnp.full_like(col, y.shape[-1]))
    best = jnp.min(cand, axis=-1, keepdims=True).astype(jnp.float32)

    cont = jnp.tanh(y)                                  # only cont columns used

    out = jnp.where(is_disc, probs,
          jnp.where(is_cont, cont,
          jnp.where(is_best, jnp.broadcast_to(best, y.shape), 0.0)))
    o_ref[...] = out


def pallas_fused_head(conv_out, w1, b1, w2, b2, mask_padded, n_disc, n_cont):
    M = conv_out.shape[0]
    return pl.pallas_call(
        functools.partial(_fused_head_kernel, n_disc=n_disc, n_cont=n_cont),
        out_shape=jax.ShapeDtypeStruct((M, OUT_W), jnp.float32),
        in_specs=[pl.BlockSpec(memory_space=pltpu.MemorySpace.VMEM)] * 6,
        out_specs=pl.BlockSpec(memory_space=pltpu.MemorySpace.VMEM),
    )(conv_out, w1, b1, w2, b2, mask_padded)


# ----------------------------------------------------------------------------
# Conv = im2col (channels-last, no NCHW round trips) + Pallas MXU matmul
# ----------------------------------------------------------------------------
def conv2d_relu_nhwc(x_nhwc, w_flat, b, kh, kw, stride):
    """x:(N,H,W,C) bf16; w_flat:(C*KH*KW, O) bf16 with channel-major patch
    ordering (== torch weight.view(O, C*KH*KW)).  Returns NHWC bf16."""
    N, H, W, C = x_nhwc.shape
    O = w_flat.shape[1]
    Ho = (H - kh) // stride + 1
    Wo = (W - kw) // stride + 1
    # feature order of the patch dim is (c, kh, kw) channel-major -> matches
    # the flattened torch conv weight, so a plain matmul reproduces the conv.
    patches = lax.conv_general_dilated_patches(
        x_nhwc, filter_shape=(kh, kw), window_strides=(stride, stride),
        padding="VALID", dimension_numbers=("NHWC", "HWIO", "NHWC"))
    patches = patches.reshape(N * Ho * Wo, C * kh * kw)
    out = pallas_conv_matmul(patches, w_flat, b)
    return out.reshape(N, Ho, Wo, O)


# ----------------------------------------------------------------------------
# Parameters: torch-layout init + one-time layout/dtype prep
# ----------------------------------------------------------------------------
def init_params(key, in_channels, conv_out_size, n_disc, n_cont):
    ks = jax.random.split(key, 10)

    def w(k, shape, scale=0.05):
        return jax.random.normal(k, shape, jnp.float32) * scale

    return {
        "c1_w": w(ks[0], (32, in_channels, 8, 8)), "c1_b": w(ks[1], (32,)),
        "c2_w": w(ks[2], (64, 32, 4, 4)),          "c2_b": w(ks[3], (64,)),
        "c3_w": w(ks[4], (64, 64, 3, 3)),          "c3_b": w(ks[5], (64,)),
        "d1_w": w(ks[6], (conv_out_size, 512)),    "d1_b": jnp.zeros((512,), jnp.float32),
        "d2_w": w(ks[7], (512, n_disc)),           "d2_b": jnp.zeros((n_disc,), jnp.float32),
        "k1_w": w(ks[8], (conv_out_size, 512)),    "k1_b": jnp.zeros((512,), jnp.float32),
        "k2_w": w(ks[9], (512, n_cont)),           "k2_b": jnp.zeros((n_cont,), jnp.float32),
    }


def prepare_params(params, n_disc, n_cont):
    """One-time prep: torch-layout -> matmul-ready bf16 weights; the two head
    layers are concatenated (d||k hidden) and the final projection is laid out
    block-diagonally into a 128-lane-wide weight so the head output is lane
    dense."""
    assert n_disc + n_cont + 1 <= OUT_W

    def conv_flat(w):
        O = w.shape[0]
        return w.reshape(O, -1).T.astype(jnp.bfloat16)       # (C*KH*KW, O)

    w1 = jnp.concatenate([params["d1_w"], params["k1_w"]], axis=1)   # (K, 1024)
    b1 = jnp.concatenate([params["d1_b"], params["k1_b"]])           # (1024,)
    Hd = params["d1_w"].shape[1]
    H2 = w1.shape[1]

    w2 = jnp.zeros((H2, OUT_W), jnp.float32)
    w2 = w2.at[:Hd, :n_disc].set(params["d2_w"])
    w2 = w2.at[Hd:, n_disc:n_disc + n_cont].set(params["k2_w"])
    b2 = jnp.zeros((OUT_W,), jnp.float32)
    b2 = b2.at[:n_disc].set(params["d2_b"])
    b2 = b2.at[n_disc:n_disc + n_cont].set(params["k2_b"])

    return {
        "c1_w": conv_flat(params["c1_w"]), "c1_b": params["c1_b"],
        "c2_w": conv_flat(params["c2_w"]), "c2_b": params["c2_b"],
        "c3_w": conv_flat(params["c3_w"]), "c3_b": params["c3_b"],
        "w1": w1.astype(jnp.bfloat16), "b1": b1.reshape(1, H2).astype(jnp.float32),
        "w2": w2.astype(jnp.bfloat16), "b2": b2.reshape(1, OUT_W).astype(jnp.float32),
    }


# ----------------------------------------------------------------------------
# Forward
# ----------------------------------------------------------------------------
@functools.partial(jax.jit, static_argnames=("n_disc", "n_cont"))
def hybrid_dqn_device(prep, x, mask, inventory, allowed_actions, *, n_disc, n_cont):
    N = x.shape[0]

    # NCHW -> NHWC once; bf16 activations all the way through the conv stack.
    h = jnp.transpose(x, (0, 2, 3, 1)).astype(jnp.bfloat16)
    h = conv2d_relu_nhwc(h, prep["c1_w"], prep["c1_b"], 8, 8, 4)
    h = conv2d_relu_nhwc(h, prep["c2_w"], prep["c2_b"], 4, 4, 2)
    h = conv2d_relu_nhwc(h, prep["c3_w"], prep["c3_b"], 3, 3, 1)
    # flatten in torch's NCHW .view(N, -1) order (trivial when spatial is 1x1)
    conv_out = jnp.transpose(h, (0, 3, 1, 2)).reshape(N, -1)

    mask_p = jnp.pad(mask.astype(jnp.float32), ((0, 0), (0, OUT_W - n_disc)))
    slab = pallas_fused_head(conv_out, prep["w1"], prep["b1"],
                             prep["w2"], prep["b2"], mask_p, n_disc, n_cont)

    q_values = slab[:, :n_disc]
    continuous_action_params = slab[:, n_disc:n_disc + n_cont]
    best = slab[:, n_disc + n_cont].astype(jnp.int32)        # argmax from kernel

    # TODO(synk): env.allowed_actions lookup + per-sample inventory matching is
    # host/environment glue in the original module; reproduced with a synthetic
    # allowed_actions table in plain JAX (exact-equality lookup replaced by
    # nearest-match, identical when an exact match exists).
    value_of_max_action = allowed_actions[best]
    inv = inventory[:, 0, :]
    match_idx = jnp.argmin(jnp.abs(inv - value_of_max_action[:, None]), axis=1)

    actions_dev = jnp.stack([match_idx.astype(jnp.float32),
                             continuous_action_params[:, 0],
                             continuous_action_params[:, 1]], axis=1)
    return q_values, continuous_action_params, actions_dev


def hybrid_dqn_forward(prep, x, mask, inventory, allowed_actions, n_disc, n_cont):
    q_values, cont_params, actions_dev = hybrid_dqn_device(
        prep, x, mask, inventory, allowed_actions, n_disc=n_disc, n_cont=n_cont)
    # ONE device->host transfer instead of 3*N blocking item() calls.
    a = np.asarray(jax.device_get(actions_dev))
    actions = [[int(a[i, 0]), float(a[i, 1]), float(a[i, 2])]
               for i in range(a.shape[0])]
    return q_values, cont_params, actions


# ----------------------------------------------------------------------------
if __name__ == "__main__":
    key = jax.random.PRNGKey(0)
    k_x, k_p, k_m = jax.random.split(key, 3)

    # Small shapes consistent with the module's conv stack (needs H,W >= 36).
    N, C, H, W = 2, 4, 36, 36
    n_actions_discrete, n_actions_continuous = 6, 2

    # conv output spatial: 36 -> 8 -> 3 -> 1  => conv_out_size = 64 * 1 * 1
    conv_out_size = 64 * 1 * 1

    x = jax.random.normal(k_x, (N, C, H, W), jnp.float32)

    # mask: at least one allowed action per row
    mask = (jax.random.uniform(k_m, (N, n_actions_discrete)) > 0.3).astype(jnp.float32)
    mask = mask.at[:, 0].set(1.0)

    # synthetic env.allowed_actions and inventory (inventory[i] is a permutation
    # of allowed action values, so the index lookup always succeeds)
    allowed_actions = jnp.arange(n_actions_discrete, dtype=jnp.float32) * 10.0
    inventory = jnp.stack([
        allowed_actions[jnp.array([3, 1, 0, 5, 2, 4])],
        allowed_actions[jnp.array([5, 4, 3, 2, 1, 0])],
    ]).reshape(N, 1, n_actions_discrete)

    params = init_params(k_p, C, conv_out_size,
                         n_actions_discrete, n_actions_continuous)
    prep = prepare_params(params, n_actions_discrete, n_actions_continuous)

    q_values, cont_params, actions = hybrid_dqn_forward(
        prep, x, mask, inventory, allowed_actions,
        n_actions_discrete, n_actions_continuous)

    jax.block_until_ready(q_values)
    jax.block_until_ready(cont_params)

    assert q_values.shape == (N, n_actions_discrete)
    assert cont_params.shape == (N, n_actions_continuous)
    assert len(actions) == N and len(actions[0]) == 3

    print("KERNEL_OK")
</pallas_src>

<mosaic_0001>
module attributes {stable_mosaic.version = 11 : i64} {
  func.func @_matmul_bias_relu_kernel(%arg0: memref<128x256xbf16, #tpu.memory_space<vmem>>, %arg1: memref<256x32xbf16, #tpu.memory_space<vmem>>, %arg2: memref<1x32xf32, #tpu.memory_space<vmem>>, %arg3: memref<128x32xbf16, #tpu.memory_space<vmem>>) attributes {dimension_semantics = [], scalar_prefetch = 0 : i64, scratch_operands = 0 : i64, tpu.core_type = #tpu.core_type<tc>} {
    %c0 = arith.constant 0 : index
    %c0_0 = arith.constant 0 : index
    %0 = vector.load %arg0[%c0, %c0_0] : memref<128x256xbf16, #tpu.memory_space<vmem>>, vector<128x256xbf16>
    %c0_1 = arith.constant 0 : index
    %c0_2 = arith.constant 0 : index
    %1 = vector.load %arg1[%c0_1, %c0_2] : memref<256x32xbf16, #tpu.memory_space<vmem>>, vector<256x32xbf16>
    %cst = arith.constant dense<0.000000e+00> : vector<128x32xf32>
    %2 = tpu.matmul %0, %1, %cst {dimension_numbers = #tpu.dot_dimension_numbers<[1], [0], [0], [1], [0, 0, 1, 1], [], []>} : vector<128x256xbf16>, vector<256x32xbf16>, vector<128x32xf32> -> vector<128x32xf32>
    %c0_3 = arith.constant 0 : index
    %c0_4 = arith.constant 0 : index
    %3 = vector.load %arg2[%c0_3, %c0_4] : memref<1x32xf32, #tpu.memory_space<vmem>>, vector<1x32xf32>
    %4 = vector.broadcast %3 : vector<1x32xf32> to vector<128x32xf32>
    %5 = arith.addf %2, %4 : vector<128x32xf32>
    %cst_5 = arith.constant 0.000000e+00 : f32
    %6 = vector.broadcast %cst_5 : f32 to vector<128x32xf32>
    %7 = arith.maximumf %5, %6 : vector<128x32xf32>
    %8 = arith.truncf %7 : vector<128x32xf32> to vector<128x32xbf16>
    %c0_6 = arith.constant 0 : index
    %c0_7 = arith.constant 0 : index
    %9 = vector.load %arg3[%c0_6, %c0_7] : memref<128x32xbf16, #tpu.memory_space<vmem>>, vector<128x32xbf16>
    tpu.vector_store %arg3[%c0_6, %c0_7], %8 {strides = array<i32>} : memref<128x32xbf16, #tpu.memory_space<vmem>>, vector<128x32xbf16>,
    return
  }
}

module attributes {stable_mosaic.version = 11 : i64} {
  func.func @_matmul_bias_relu_kernel(%arg0: memref<18x512xbf16, #tpu.memory_space<vmem>>, %arg1: memref<512x64xbf16, #tpu.memory_space<vmem>>, %arg2: memref<1x64xf32, #tpu.memory_space<vmem>>, %arg3: memref<18x64xbf16, #tpu.memory_space<vmem>>) attributes {dimension_semantics = [], scalar_prefetch = 0 : i64, scratch_operands = 0 : i64, tpu.core_type = #tpu.core_type<tc>} {
    %c0 = arith.constant 0 : index
    %c0_0 = arith.constant 0 : index
    %0 = vector.load %arg0[%c0, %c0_0] : memref<18x512xbf16, #tpu.memory_space<vmem>>, vector<18x512xbf16>
    %c0_1 = arith.constant 0 : index
    %c0_2 = arith.constant 0 : index
    %1 = vector.load %arg1[%c0_1, %c0_2] : memref<512x64xbf16, #tpu.memory_space<vmem>>, vector<512x64xbf16>
    %cst = arith.constant dense<0.000000e+00> : vector<18x64xf32>
    %2 = tpu.matmul %0, %1, %cst {dimension_numbers = #tpu.dot_dimension_numbers<[1], [0], [0], [1], [0, 0, 1, 1], [], []>} : vector<18x512xbf16>, vector<512x64xbf16>, vector<18x64xf32> -> vector<18x64xf32>
    %c0_3 = arith.constant 0 : index
    %c0_4 = arith.constant 0 : index
    %3 = vector.load %arg2[%c0_3, %c0_4] : memref<1x64xf32, #tpu.memory_space<vmem>>, vector<1x64xf32>
    %4 = vector.broadcast %3 : vector<1x64xf32> to vector<18x64xf32>
    %5 = arith.addf %2, %4 : vector<18x64xf32>
    %cst_5 = arith.constant 0.000000e+00 : f32
    %6 = vector.broadcast %cst_5 : f32 to vector<18x64xf32>
    %7 = arith.maximumf %5, %6 : vector<18x64xf32>
    %8 = arith.truncf %7 : vector<18x64xf32> to vector<18x64xbf16>
    %c0_6 = arith.constant 0 : index
    %c0_7 = arith.constant 0 : index
    %9 = vector.load %arg3[%c0_6, %c0_7] : memref<18x64xbf16, #tpu.memory_space<vmem>>, vector<18x64xbf16>
    tpu.vector_store %arg3[%c0_6, %c0_7], %8 {strides = array<i32>} : memref<18x64xbf16, #tpu.memory_space<vmem>>, vector<18x64xbf16>,
    return
  }
}

module attributes {stable_mosaic.version = 11 : i64} {
  func.func @_matmul_bias_relu_kernel(%arg0: memref<2x576xbf16, #tpu.memory_space<vmem>>, %arg1: memref<576x64xbf16, #tpu.memory_space<vmem>>, %arg2: memref<1x64xf32, #tpu.memory_space<vmem>>, %arg3: memref<2x64xbf16, #tpu.memory_space<vmem>>) attributes {dimension_semantics = [], scalar_prefetch = 0 : i64, scratch_operands = 0 : i64, tpu.core_type = #tpu.core_type<tc>} {
    %c0 = arith.constant 0 : index
    %c0_0 = arith.constant 0 : index
    %0 = vector.load %arg0[%c0, %c0_0] : memref<2x576xbf16, #tpu.memory_space<vmem>>, vector<2x576xbf16>
    %c0_1 = arith.constant 0 : index
    %c0_2 = arith.constant 0 : index
    %1 = vector.load %arg1[%c0_1, %c0_2] : memref<576x64xbf16, #tpu.memory_space<vmem>>, vector<576x64xbf16>
    %cst = arith.constant dense<0.000000e+00> : vector<2x64xf32>
    %2 = tpu.matmul %0, %1, %cst {dimension_numbers = #tpu.dot_dimension_numbers<[1], [0], [0], [1], [0, 0, 1, 1], [], []>} : vector<2x576xbf16>, vector<576x64xbf16>, vector<2x64xf32> -> vector<2x64xf32>
    %c0_3 = arith.constant 0 : index
    %c0_4 = arith.constant 0 : index
    %3 = vector.load %arg2[%c0_3, %c0_4] : memref<1x64xf32, #tpu.memory_space<vmem>>, vector<1x64xf32>
    %4 = vector.broadcast %3 : vector<1x64xf32> to vector<2x64xf32>
    %5 = arith.addf %2, %4 : vector<2x64xf32>
    %cst_5 = arith.constant 0.000000e+00 : f32
    %6 = vector.broadcast %cst_5 : f32 to vector<2x64xf32>
    %7 = arith.maximumf %5, %6 : vector<2x64xf32>
    %8 = arith.truncf %7 : vector<2x64xf32> to vector<2x64xbf16>
    %c0_6 = arith.constant 0 : index
    %c0_7 = arith.constant 0 : index
    %9 = vector.load %arg3[%c0_6, %c0_7] : memref<2x64xbf16, #tpu.memory_space<vmem>>, vector<2x64xbf16>
    tpu.vector_store %arg3[%c0_6, %c0_7], %8 {strides = array<i32>} : memref<2x64xbf16, #tpu.memory_space<vmem>>, vector<2x64xbf16>,
    return
  }
}

module attributes {stable_mosaic.version = 11 : i64} {
  func.func @_fused_head_kernel(%arg0: memref<2x64xbf16, #tpu.memory_space<vmem>>, %arg1: memref<64x1024xbf16, #tpu.memory_space<vmem>>, %arg2: memref<1x1024xf32, #tpu.memory_space<vmem>>, %arg3: memref<1024x128xbf16, #tpu.memory_space<vmem>>, %arg4: memref<1x128xf32, #tpu.memory_space<vmem>>, %arg5: memref<2x128xf32, #tpu.memory_space<vmem>>, %arg6: memref<2x128xf32, #tpu.memory_space<vmem>>) attributes {dimension_semantics = [], scalar_prefetch = 0 : i64, scratch_operands = 0 : i64, tpu.core_type = #tpu.core_type<tc>} {
    %c0 = arith.constant 0 : index
    %c0_0 = arith.constant 0 : index
    %0 = vector.load %arg0[%c0, %c0_0] : memref<2x64xbf16, #tpu.memory_space<vmem>>, vector<2x64xbf16>
    %c0_1 = arith.constant 0 : index
    %c0_2 = arith.constant 0 : index
    %1 = vector.load %arg1[%c0_1, %c0_2] : memref<64x1024xbf16, #tpu.memory_space<vmem>>, vector<64x1024xbf16>
    %cst = arith.constant dense<0.000000e+00> : vector<2x1024xf32>
    %2 = tpu.matmul %0, %1, %cst {dimension_numbers = #tpu.dot_dimension_numbers<[1], [0], [0], [1], [0, 0, 1, 1], [], []>} : vector<2x64xbf16>, vector<64x1024xbf16>, vector<2x1024xf32> -> vector<2x1024xf32>
    %c0_3 = arith.constant 0 : index
    %c0_4 = arith.constant 0 : index
    %3 = vector.load %arg2[%c0_3, %c0_4] : memref<1x1024xf32, #tpu.memory_space<vmem>>, vector<1x1024xf32>
    %4 = vector.broadcast %3 : vector<1x1024xf32> to vector<2x1024xf32>
    %5 = arith.addf %2, %4 : vector<2x1024xf32>
    %cst_5 = arith.constant 0.000000e+00 : f32
    %6 = vector.broadcast %cst_5 : f32 to vector<2x1024xf32>
    %7 = arith.maximumf %5, %6 : vector<2x1024xf32>
    %8 = arith.truncf %7 : vector<2x1024xf32> to vector<2x1024xbf16>
    %c0_6 = arith.constant 0 : index
    %c0_7 = arith.constant 0 : index
    %9 = vector.load %arg3[%c0_6, %c0_7] : memref<1024x128xbf16, #tpu.memory_space<vmem>>, vector<1024x128xbf16>
    %cst_8 = arith.constant dense<0.000000e+00> : vector<2x128xf32>
    %10 = tpu.matmul %8, %9, %cst_8 {dimension_numbers = #tpu.dot_dimension_numbers<[1], [0], [0], [1], [0, 0, 1, 1], [], []>} : vector<2x1024xbf16>, vector<1024x128xbf16>, vector<2x128xf32> -> vector<2x128xf32>
    %c0_9 = arith.constant 0 : index
    %c0_10 = arith.constant 0 : index
    %11 = vector.load %arg4[%c0_9, %c0_10] : memref<1x128xf32, #tpu.memory_space<vmem>>, vector<1x128xf32>
    %12 = vector.broadcast %11 : vector<1x128xf32> to vector<2x128xf32>
    %13 = arith.addf %10, %12 : vector<2x128xf32>
    %14 = tpu.iota {dimensions = array<i32: 1>} : vector<2x128xi32>
    %c6_i32 = arith.constant 6 : i32
    %15 = vector.broadcast %c6_i32 : i32 to vector<2x128xi32>
    %16 = arith.cmpi slt, %14, %15 : vector<2x128xi32>
    %c6_i32_11 = arith.constant 6 : i32
    %17 = vector.broadcast %c6_i32_11 : i32 to vector<2x128xi32>
    %18 = arith.cmpi sge, %14, %17 : vector<2x128xi32>
    %c8_i32 = arith.constant 8 : i32
    %19 = vector.broadcast %c8_i32 : i32 to vector<2x128xi32>
    %20 = arith.cmpi slt, %14, %19 : vector<2x128xi32>
    %21 = arith.andi %18, %20 : vector<2x128xi1>
    %c8_i32_12 = arith.constant 8 : i32
    %22 = vector.broadcast %c8_i32_12 : i32 to vector<2x128xi32>
    %23 = arith.cmpi eq, %14, %22 : vector<2x128xi32>
    %c0_13 = arith.constant 0 : index
    %c0_14 = arith.constant 0 : index
    %24 = vector.load %arg5[%c0_13, %c0_14] : memref<2x128xf32, #tpu.memory_space<vmem>>, vector<2x128xf32>
    %cst_15 = arith.constant 5.000000e-01 : f32
    %25 = vector.broadcast %cst_15 : f32 to vector<2x128xf32>
    %26 = arith.cmpf ogt, %24, %25 : vector<2x128xf32>
    %27 = arith.andi %16, %26 : vector<2x128xi1>
    %cst_16 = arith.constant -1.000000e+09 : f32
    %28 = vector.broadcast %cst_16 : f32 to vector<2x128xf32>
    %29 = arith.select %27, %13, %28 : vector<2x128xi1>, vector<2x128xf32>
    %cst_17 = arith.constant dense<0xFF800000> : vector<2xf32>
    %30 = vector.multi_reduction <maximumf>, %29, %cst_17 [1] : vector<2x128xf32> to vector<2xf32>
    %31 = vector.shape_cast %30 : vector<2xf32> to vector<2x1xf32>
    %32 = vector.broadcast %31 : vector<2x1xf32> to vector<2x128xf32>
    %33 = arith.subf %29, %32 : vector<2x128xf32>
    %34 = math.exp %33 : vector<2x128xf32>
    %cst_18 = arith.constant 0.000000e+00 : f32
    %35 = vector.broadcast %cst_18 : f32 to vector<2x128xf32>
    %36 = arith.select %16, %34, %35 : vector<2x128xi1>, vector<2x128xf32>
    %cst_19 = arith.constant dense<0.000000e+00> : vector<2xf32>
    %37 = vector.multi_reduction <add>, %36, %cst_19 [1] : vector<2x128xf32> to vector<2xf32>
    %38 = vector.shape_cast %37 : vector<2xf32> to vector<2x1xf32>
    %39 = tpu.reciprocal %38 {approx = true} : vector<2x1xf32> -> vector<2x1xf32>
    %40 = vector.broadcast %39 : vector<2x1xf32> to vector<2x128xf32>
    %41 = arith.mulf %36, %40 : vector<2x128xf32>
    %42 = vector.broadcast %31 : vector<2x1xf32> to vector<2x128xf32>
    %43 = arith.cmpf oge, %29, %42 : vector<2x128xf32>
    %c128_i32 = arith.constant 128 : i32
    %44 = vector.broadcast %c128_i32 : i32 to vector<2x128xi32>
    %45 = arith.select %43, %14, %44 : vector<2x128xi1>, vector<2x128xi32>
    %cst_20 = arith.constant dense<2147483647> : vector<2xi32>
    %46 = vector.multi_reduction <minsi>, %45, %cst_20 [1] : vector<2x128xi32> to vector<2xi32>
    %47 = vector.shape_cast %46 : vector<2xi32> to vector<2x1xi32>
    %48 = arith.sitofp %47 : vector<2x1xi32> to vector<2x1xf32>
    %49 = math.tanh %13 : vector<2x128xf32>
    %50 = vector.shape_cast %48 : vector<2x1xf32> to vector<2x1xf32>
    %51 = vector.broadcast %50 : vector<2x1xf32> to vector<2x128xf32>
    %cst_21 = arith.constant 0.000000e+00 : f32
    %52 = vector.broadcast %cst_21 : f32 to vector<2x128xf32>
    %53 = arith.select %23, %51, %52 : vector<2x128xi1>, vector<2x128xf32>
    %54 = arith.select %21, %49, %53 : vector<2x128xi1>, vector<2x128xf32>
    %55 = arith.select %16, %41, %54 : vector<2x128xi1>, vector<2x128xf32>
    %c0_22 = arith.constant 0 : index
    %c0_23 = arith.constant 0 : index
    %56 = vector.load %arg6[%c0_22, %c0_23] : memref<2x128xf32, #tpu.memory_space<vmem>>, vector<2x128xf32>
    tpu.vector_store %arg6[%c0_22, %c0_23], %55 {strides = array<i32>} : memref<2x128xf32, #tpu.memory_space<vmem>>, vector<2x128xf32>,
    return
  }
}

</mosaic_0001>

<bundles_post_ra>
// kernel: hybrid_dqn_device.4
= control target key start
LH: loop header
LB: loop body
LE: loop exit
PB: predicated region body
PF: predicated region fallthrough
CT: control target
= control target key end

     0   :  { %vm423_vm0 = vcmask 257024   ;;  %s830_s1 = inlined_call_operand.vmem [shape: bf16[256,32], index: 1, kind: input, shape index: {}]   ;;  %s831_s0 = inlined_call_operand.vmem [shape: bf16[128,256], index: 0, kind: input, shape index: {}]   ;;  %s832_s2 = inlined_call_operand.vmem [shape: f32[1,32], index: 2, kind: input, shape index: {}]   ;;  %s833_s3 = inlined_call_operand.vmem [shape: bf16[128,32], index: 3, kind: output, shape index: {}]  }
   0x1   :  { %v589_v0 = vld [vmem:[%s830_s1 + $0x40] sm:$0xff]   ;;  %v591_v2 = vld [vmem:[%s830_s1 + $0x48] sm:$0xff]   ;;  %v593_v4 = vld [vmem:[%s830_s1 + $0x50] sm:$0xff]  }
   0x2   :  { %v590_v1 = vld [vmem:[%s830_s1] sm:$0xff]   ;;  %509 = vmatprep.subr.bf16.mxu0 %v589_v0  ;;  %573 = vmatprep.subr.bf16.mxu1 %v589_v0  ;;  %v592_v3 = vld [vmem:[%s830_s1 + $0x8] sm:$0xff]   ;;  %v594_v5 = vld [vmem:[%s830_s1 + $0x10] sm:$0xff]  }
   0x3   :  { %510 = vmatpush3.bf16.msra.mxu0 %v590_v1  ;;  %581 = vmatpush3.bf16.msra.mxu1 %v590_v1  ;;  %v595_v6 = vld [vmem:[%s830_s1 + $0x58] sm:$0xff]   ;;  %v597_v8 = vld [vmem:[%s830_s1 + $0x60] sm:$0xff]   ;;  %v599_v10 = vld [vmem:[%s830_s1 + $0x68] sm:$0xff]  }
   0x4   :  { %511 = vmatprep.subr.bf16.mxu0 %v591_v2  ;;  %574 = vmatprep.subr.bf16.mxu1 %v591_v2  ;;  %v596_v7 = vld [vmem:[%s830_s1 + $0x18] sm:$0xff]   ;;  %v598_v9 = vld [vmem:[%s830_s1 + $0x20] sm:$0xff]   ;;  %v600_v13 = vld [vmem:[%s830_s1 + $0x28] sm:$0xff]  }
   0x5   :  { %v607_v11 = vld [vmem:[%s831_s0 + $0x4] ss:$8 sps:$4 sm:$0xff]   ;;  %v601_v14 = vld [vmem:[%s830_s1 + $0x70] sm:$0xff]   ;;  %v603_v16 = vld [vmem:[%s830_s1 + $0x78] sm:$0xff]  }
   0x6   :  { %v610_v12 = vld [vmem:[%s831_s0 + $0x44] ss:$8 sps:$4 sm:$0xff]   ;;  %278 = vmatprep.mubr.bf16.mxu0 %v607_v11  ;;  %v602_v15 = vld [vmem:[%s830_s1 + $0x30] sm:$0xff]   ;;  %v604_v17 = vld [vmem:[%s830_s1 + $0x38] sm:$0xff]  }
   0x7   :  { %512 = vmatpush3.bf16.msra.mxu0 %v592_v3  ;;  %582 = vmatpush3.bf16.msra.mxu1 %v592_v3  ;;  %v605_v18 = vld [vmem:[%s831_s0] ss:$8 sps:$4 sm:$0xff]   ;;  %v611_v20 = vld [vmem:[%s831_s0 + $0x14] ss:$8 sps:$4 sm:$0xff]   ;;  %v615_v22 = vld [vmem:[%s831_s0 + $0x10] ss:$8 sps:$4 sm:$0xff]  }
   0x8   :  { %513 = vmatprep.subr.bf16.mxu0 %v593_v4  ;;  %575 = vmatprep.subr.bf16.mxu1 %v593_v4  ;;  %v608_v19 = vld [vmem:[%s831_s0 + $0x40] ss:$8 sps:$4 sm:$0xff]   ;;  %v613_v21 = vld [vmem:[%s831_s0 + $0x54] ss:$8 sps:$4 sm:$0xff]   ;;  %v616_v23 = vld [vmem:[%s831_s0 + $0x50] ss:$8 sps:$4 sm:$0xff]  }
   0x9   :  { %310 = vmatprep.mubr.bf16.mxu1 %v610_v12  ;;  %v617_v24 = vld [vmem:[%s831_s0 + $0x24] ss:$8 sps:$4 sm:$0xff]   ;;  %v621_v26 = vld [vmem:[%s831_s0 + $0x20] ss:$8 sps:$4 sm:$0xff]   ;;  %v623_v28 = vld [vmem:[%s831_s0 + $0x34] ss:$8 sps:$4 sm:$0xff]  }
   0xa   :  { %v619_v25 = vld [vmem:[%s831_s0 + $0x64] ss:$8 sps:$4 sm:$0xff]   ;;  %v622_v27 = vld [vmem:[%s831_s0 + $0x60] ss:$8 sps:$4 sm:$0xff]   ;;  %v625_v29 = vld [vmem:[%s831_s0 + $0x74] ss:$8 sps:$4 sm:$0xff]  }
   0xb   :  { %514 = vmatpush3.bf16.msra.mxu0 %v594_v5  ;;  %583 = vmatpush3.bf16.msra.mxu1 %v594_v5  ;;  %v627_v30 = vld [vmem:[%s831_s0 + $0x30] ss:$8 sps:$4 sm:$0xff]   ;;  %v748_v34 = vld [vmem:[%s832_s2] ss:$0 sm:$0xff] }
   0xc   :  { %515 = vmatprep.subr.bf16.mxu0 %v595_v6  ;;  %576 = vmatprep.subr.bf16.mxu1 %v595_v6  ;;  %v628_v31 = vld [vmem:[%s831_s0 + $0x70] ss:$8 sps:$4 sm:$0xff]  }
   0xf   :  { %516 = vmatpush3.bf16.msra.mxu0 %v596_v7  ;;  %584 = vmatpush3.bf16.msra.mxu1 %v596_v7 }
  0x10   :  { %517 = vmatprep.subr.bf16.mxu0 %v597_v8  ;;  %577 = vmatprep.subr.bf16.mxu1 %v597_v8 }
  0x13   :  { %518 = vmatpush3.bf16.msra.mxu0 %v598_v9  ;;  %585 = vmatpush3.bf16.msra.mxu1 %v598_v9 }
  0x14   :  { %519 = vmatprep.subr.bf16.mxu0 %v599_v10  ;;  %578 = vmatprep.subr.bf16.mxu1 %v599_v10 }
  0x17   :  { %520 = vmatpush3.bf16.msra.mxu0 %v600_v13  ;;  %586 = vmatpush3.bf16.msra.mxu1 %v600_v13 }
  0x18   :  { %521 = vmatprep.subr.bf16.mxu0 %v601_v14  ;;  %579 = vmatprep.subr.bf16.mxu1 %v601_v14 }
  0x1b   :  { %522 = vmatpush3.bf16.msra.mxu0 %v602_v15  ;;  %587 = vmatpush3.bf16.msra.mxu1 %v602_v15 }
  0x1c   :  { %523 = vmatprep.subr.bf16.mxu0 %v603_v16  ;;  %580 = vmatprep.subr.bf16.mxu1 %v603_v16 }
  0x1f   :  { %524 = vmatpush3.bf16.msra.mxu0 %v604_v17  ;;  %588 = vmatpush3.bf16.msra.mxu1 %v604_v17 }
  0x22   :  { %279 = vmatmul.mubr.bf16.vlgmr.msra.gmra.mrb[0].mxu0 %v605_v18  ;;  %311 = vmatmul.mubr.bf16.vlgmr.msra.gmra.mrb[0].mxu1 %v608_v19 }
  0x23   :  { %286 = vmatprep.mubr.bf16.mxu0 %v611_v20  ;;  %318 = vmatprep.mubr.bf16.mxu1 %v613_v21 }
  0x2a   :  { %287 = vmatmul.mubr.bf16.gmra.mrb[4].mxu0 %v615_v22  ;;  %319 = vmatmul.mubr.bf16.gmra.mrb[4].mxu1 %v616_v23 }
  0x2b   :  { %294 = vmatprep.mubr.bf16.mxu0 %v617_v24  ;;  %326 = vmatprep.mubr.bf16.mxu1 %v619_v25 }
  0x32   :  { %295 = vmatmul.mubr.bf16.gmra.mrb[8].mxu0 %v621_v26  ;;  %327 = vmatmul.mubr.bf16.gmra.mrb[8].mxu1 %v622_v27 }
  0x33   :  { %302 = vmatprep.mubr.bf16.mxu0 %v623_v28  ;;  %334 = vmatprep.mubr.bf16.mxu1 %v625_v29 }
  0x3a   :  { %303 = vmatmul.mubr.bf16.gmra.mrb[12].mxu0 %v627_v30  ;;  %335 = vmatmul.mubr.bf16.gmra.mrb[12].mxu1 %v628_v31 }
  0xf5   :  { %v525_v32 = vpop.f32.mrb[0].mxu0  ;;  %v549_v33 = vpop.f32.mrb[0].mxu1 }
  0xf6   :  { %v526_v35 = vpop.f32.mrb[1].mxu0  ;;  %v550_v36 = vpop.f32.mrb[1].mxu1 }
  0xf7   :  { %v527_v37 = vadd.f32 %v526_v35, %v525_v32  ;;  %v551_v38 = vadd.f32 %v550_v36, %v549_v33  ;;  %v528_v39 = vpop.f32.mrb[2].mxu0  ;;  %v552_v40 = vpop.f32.mrb[2].mxu1 }
  0xf8   :  { %v529_v41 = vpop.f32.mrb[3].mxu0  ;;  %v553_v42 = vpop.f32.mrb[3].mxu1 }
  0xf9   :  { %v281_v43 = vadd.f32 %v527_v37, %v748_v34  ;;  %v313_v44 = vadd.f32 %v551_v38, %v748_v34  ;;  %v530_v45 = vadd.f32 %v529_v41, %v528_v39  ;;  %v554_v46 = vadd.f32 %v553_v42, %v552_v40 }
  0xfb   :  { %v343_v47 = vmax.f32 %v281_v43, 0.0  ;;  %v351_v48 = vmax.f32 %v313_v44, 0.0  ;;  %v284_v49 = vadd.f32 %v530_v45, %v748_v34  ;;  %v316_v50 = vadd.f32 %v554_v46, %v748_v34 }
  0xfd   :  { %v493_v51 = vpack.c.bf16 %v343_v47, %v343_v47  ;;  %v501_v52 = vpack.c.bf16 %v351_v48, %v351_v48  ;;  %v344_v53 = vmax.f32 %v284_v49, 0.0  ;;  %v352_v54 = vmax.f32 %v316_v50, 0.0  ;;  %v531_v55 = vpop.f32.mrb[4].mxu0  ;;  %v555_v56 = vpop.f32.mrb[4].mxu1 }
  0xfe   :  { %v532_v57 = vpop.f32.mrb[5].mxu0  ;;  %v556_v58 = vpop.f32.mrb[5].mxu1 }
  0xff   :  { %424 = vst.msk [vmem:[%s833_s3] sm:$0xf] %vm423_vm0, %v493_v51  ;;  %432 = vst.msk [vmem:[%s833_s3 + $0x20] sm:$0xf] %vm423_vm0, %v501_v52  ;;  %v494_v59 = vpack.c.bf16 %v344_v53, %v344_v53  ;;  %v502_v60 = vpack.c.bf16 %v352_v54, %v352_v54  ;;  %v533_v61 = vadd.f32 %v532_v57, %v531_v55  ;;  %v534_v63 = vpop.f32.mrb[6].mxu0  ;;  %v558_v0 = vpop.f32.mrb[6].mxu1 }
 0x100   :  { %v557_v62 = vadd.f32 %v556_v58, %v555_v56  ;;  %v535_v1 = vpop.f32.mrb[7].mxu0  ;;  %v559_v2 = vpop.f32.mrb[7].mxu1 }
 0x101   :  { %425 = vst.msk [vmem:[%s833_s3 + $0x4] sm:$0xf] %vm423_vm0, %v494_v59  ;;  %433 = vst.msk [vmem:[%s833_s3 + $0x24] sm:$0xf] %vm423_vm0, %v502_v60  ;;  %v289_v3 = vadd.f32 %v533_v61, %v748_v34  ;;  %v536_v5 = vadd.f32 %v535_v1, %v534_v63  ;;  %v560_v6 = vadd.f32 %v559_v2, %v558_v0 }
 0x102   :  { %v321_v4 = vadd.f32 %v557_v62, %v748_v34 }
 0x103   :  { %v345_v7 = vmax.f32 %v289_v3, 0.0  ;;  %v292_v9 = vadd.f32 %v536_v5, %v748_v34  ;;  %v324_v10 = vadd.f32 %v560_v6, %v748_v34 }
 0x104   :  { %v353_v8 = vmax.f32 %v321_v4, 0.0 }
 0x105   :  { %v495_v11 = vpack.c.bf16 %v345_v7, %v345_v7  ;;  %v346_v13 = vmax.f32 %v292_v9, 0.0  ;;  %v354_v14 = vmax.f32 %v324_v10, 0.0  ;;  %v537_v15 = vpop.f32.mrb[8].mxu0  ;;  %v561_v16 = vpop.f32.mrb[8].mxu1 }
 0x106   :  { %v503_v12 = vpack.c.bf16 %v353_v8, %v353_v8  ;;  %v538_v17 = vpop.f32.mrb[9].mxu0  ;;  %v562_v18 = vpop.f32.mrb[9].mxu1 }
 0x107   :  { %426 = vst.msk [vmem:[%s833_s3 + $0x8] sm:$0xf] %vm423_vm0, %v495_v11  ;;  %v496_v19 = vpack.c.bf16 %v346_v13, %v346_v13  ;;  %v504_v20 = vpack.c.bf16 %v354_v14, %v354_v14  ;;  %v539_v21 = vadd.f32 %v538_v17, %v537_v15  ;;  %v563_v22 = vadd.f32 %v562_v18, %v561_v16  ;;  %v540_v23 = vpop.f32.mrb[10].mxu0  ;;  %v564_v24 = vpop.f32.mrb[10].mxu1 }
 0x108   :  { %434 = vst.msk [vmem:[%s833_s3 + $0x28] sm:$0xf] %vm423_vm0, %v503_v12  ;;  %v541_v25 = vpop.f32.mrb[11].mxu0  ;;  %v565_v26 = vpop.f32.mrb[11].mxu1 }
 0x109   :  { %427 = vst.msk [vmem:[%s833_s3 + $0xc] sm:$0xf] %vm423_vm0, %v496_v19  ;;  %435 = vst.msk [vmem:[%s833_s3 + $0x2c] sm:$0xf] %vm423_vm0, %v504_v20  ;;  %v297_v27 = vadd.f32 %v539_v21, %v748_v34  ;;  %v329_v28 = vadd.f32 %v563_v22, %v748_v34  ;;  %v542_v29 = vadd.f32 %v541_v25, %v540_v23 }
 0x10a   :  { %v566_v30 = vadd.f32 %v565_v26, %v564_v24 }
 0x10b   :  { %v347_v31 = vmax.f32 %v297_v27, 0.0  ;;  %v355_v32 = vmax.f32 %v329_v28, 0.0  ;;  %v300_v33 = vadd.f32 %v542_v29, %v748_v34 }
 0x10c   :  { %v332_v35 = vadd.f32 %v566_v30, %v748_v34 }
 0x10d   :  { %v497_v36 = vpack.c.bf16 %v347_v31, %v347_v31  ;;  %v505_v37 = vpack.c.bf16 %v355_v32, %v355_v32  ;;  %v348_v38 = vmax.f32 %v300_v33, 0.0  ;;  %v543_v40 = vpop.f32.mrb[12].mxu0  ;;  %v567_v41 = vpop.f32.mrb[12].mxu1 }
 0x10e   :  { %v356_v39 = vmax.f32 %v332_v35, 0.0  ;;  %v544_v42 = vpop.f32.mrb[13].mxu0  ;;  %v568_v43 = vpop.f32.mrb[13].mxu1 }
 0x10f   :  { %428 = vst.msk [vmem:[%s833_s3 + $0x10] sm:$0xf] %vm423_vm0, %v497_v36  ;;  %436 = vst.msk [vmem:[%s833_s3 + $0x30] sm:$0xf] %vm423_vm0, %v505_v37  ;;  %v498_v44 = vpack.c.bf16 %v348_v38, %v348_v38  ;;  %v545_v46 = vadd.f32 %v544_v42, %v543_v40  ;;  %v569_v47 = vadd.f32 %v568_v43, %v567_v41  ;;  %v546_v48 = vpop.f32.mrb[14].mxu0  ;;  %v570_v49 = vpop.f32.mrb[14].mxu1 }
 0x110   :  { %v506_v45 = vpack.c.bf16 %v356_v39, %v356_v39  ;;  %v547_v50 = vpop.f32.mrb[15].mxu0  ;;  %v571_v51 = vpop.f32.mrb[15].mxu1 }
 0x111   :  { %429 = vst.msk [vmem:[%s833_s3 + $0x14] sm:$0xf] %vm423_vm0, %v498_v44  ;;  %v305_v52 = vadd.f32 %v545_v46, %v748_v34  ;;  %v337_v53 = vadd.f32 %v569_v47, %v748_v34  ;;  %v548_v54 = vadd.f32 %v547_v50, %v546_v48  ;;  %v572_v55 = vadd.f32 %v571_v51, %v570_v49 }
 0x112   :  { %437 = vst.msk [vmem:[%s833_s3 + $0x34] sm:$0xf] %vm423_vm0, %v506_v45 }
 0x113   :  { %v349_v56 = vmax.f32 %v305_v52, 0.0  ;;  %v357_v57 = vmax.f32 %v337_v53, 0.0  ;;  %v308_v58 = vadd.f32 %v548_v54, %v748_v34  ;;  %v340_v59 = vadd.f32 %v572_v55, %v748_v34 }
 0x115   :  { %v499_v60 = vpack.c.bf16 %v349_v56, %v349_v56  ;;  %v507_v61 = vpack.c.bf16 %v357_v57, %v357_v57  ;;  %v350_v62 = vmax.f32 %v308_v58, 0.0  ;;  %v358_v63 = vmax.f32 %v340_v59, 0.0 }
 0x117   :  { %430 = vst.msk [vmem:[%s833_s3 + $0x18] sm:$0xf] %vm423_vm0, %v499_v60  ;;  %438 = vst.msk [vmem:[%s833_s3 + $0x38] sm:$0xf] %vm423_vm0, %v507_v61  ;;  %v500_v0 = vpack.c.bf16 %v350_v62, %v350_v62  ;;  %v508_v1 = vpack.c.bf16 %v358_v63, %v358_v63 }
 0x119   :  { %431 = vst.msk [vmem:[%s833_s3 + $0x1c] sm:$0xf] %vm423_vm0, %v500_v0  ;;  %439 = vst.msk [vmem:[%s833_s3 + $0x3c] sm:$0xf] %vm423_vm0, %v508_v1 }

// kernel: hybrid_dqn_device.5
= control target key start
LH: loop header
LB: loop body
LE: loop exit
PB: predicated region body
PF: predicated region fallthrough
CT: control target
= control target key end

     0   :  { %vm430_vm0 = vcmask 519168   ;;  %vm433_vm1 = vcmask 516096   ;;  %s730_s1 = inlined_call_operand.vmem [shape: bf16[512,64], index: 1, kind: input, shape index: {}]   ;;  %s731_s0 = inlined_call_operand.vmem [shape: bf16[18,512], index: 0, kind: input, shape index: {}]   ;;  %s732_s2 = inlined_call_operand.vmem [shape: f32[1,64], index: 2, kind: input, shape index: {}]   ;;  %s733_s3 = inlined_call_operand.vmem [shape: bf16[18,64], index: 3, kind: output, shape index: {}]  }
   0x1   :  { %v542_v0 = vld [vmem:[%s730_s1 + $0x40] sm:$0xff]   ;;  %v546_v4 = vld [vmem:[%s730_s1 + $0x48] sm:$0xff]   ;;  %v550_v8 = vld [vmem:[%s730_s1 + $0x50] sm:$0xff]  }
   0x2   :  { %v543_v1 = vld [vmem:[%s730_s1 + $0xc0] sm:$0xff]   ;;  %486 = vmatprep.subr.bf16.mxu0 %v542_v0  ;;  %v547_v5 = vld [vmem:[%s730_s1 + $0xc8] sm:$0xff]   ;;  %v551_v9 = vld [vmem:[%s730_s1 + $0xd0] sm:$0xff]  }
   0x3   :  { %v544_v2 = vld [vmem:[%s730_s1] sm:$0xff]   ;;  %514 = vmatprep.subr.bf16.mxu1 %v543_v1  ;;  %v548_v6 = vld [vmem:[%s730_s1 + $0x8] sm:$0xff]   ;;  %v552_v10 = vld [vmem:[%s730_s1 + $0x10] sm:$0xff]  }
   0x4   :  { %v545_v3 = vld [vmem:[%s730_s1 + $0x80] sm:$0xff]   ;;  %487 = vmatpush3.bf16.msra.mxu0 %v544_v2  ;;  %v549_v7 = vld [vmem:[%s730_s1 + $0x88] sm:$0xff]   ;;  %v553_v11 = vld [vmem:[%s730_s1 + $0x90] sm:$0xff]  }
   0x5   :  { %515 = vmatpush3.bf16.msra.mxu1 %v545_v3  ;;  %488 = vmatprep.subr.bf16.mxu0 %v546_v4  ;;  %v554_v12 = vld [vmem:[%s730_s1 + $0x58] sm:$0xff]   ;;  %v558_v16 = vld [vmem:[%s730_s1 + $0x60] sm:$0xff]   ;;  %v562_v20 = vld [vmem:[%s730_s1 + $0x68] sm:$0xff]  }
   0x6   :  { %516 = vmatprep.subr.bf16.mxu1 %v547_v5  ;;  %v555_v13 = vld [vmem:[%s730_s1 + $0xd8] sm:$0xff]   ;;  %v559_v17 = vld [vmem:[%s730_s1 + $0xe0] sm:$0xff]   ;;  %v563_v21 = vld [vmem:[%s730_s1 + $0xe8] sm:$0xff]  }
   0x7   :  { %v556_v14 = vld [vmem:[%s730_s1 + $0x18] sm:$0xff]   ;;  %v560_v18 = vld [vmem:[%s730_s1 + $0x20] sm:$0xff]   ;;  %v564_v22 = vld [vmem:[%s730_s1 + $0x28] sm:$0xff]  }
   0x8   :  { %489 = vmatpush3.bf16.msra.mxu0 %v548_v6  ;;  %v557_v15 = vld [vmem:[%s730_s1 + $0x98] sm:$0xff]   ;;  %v561_v19 = vld [vmem:[%s730_s1 + $0xa0] sm:$0xff]   ;;  %v565_v23 = vld [vmem:[%s730_s1 + $0xa8] sm:$0xff]  }
   0x9   :  { %517 = vmatpush3.bf16.msra.mxu1 %v549_v7  ;;  %490 = vmatprep.subr.bf16.mxu0 %v550_v8  ;;  %v566_v24 = vld [vmem:[%s730_s1 + $0x70] sm:$0xff]   ;;  %v570_v28 = vld [vmem:[%s730_s1 + $0x78] sm:$0xff]   ;;  %v19_v36 = vld [vmem:[%s731_s0 + $0x20] sm:$0x11] }
   0xa   :  { %518 = vmatprep.subr.bf16.mxu1 %v551_v9  ;;  %v567_v25 = vld [vmem:[%s730_s1 + $0xf0] sm:$0xff]   ;;  %v571_v29 = vld [vmem:[%s730_s1 + $0xf8] sm:$0xff]   ;;  %v445_v37 = vcombine.high %v19_v36, %v19_v36  ;;  %v20_v38 = vld [vmem:[%s731_s0 + $0x28] sm:$0x11]  ;;  %v444_v40 = vcombine.low %v19_v36, %v19_v36 }
   0xb   :  { %v568_v26 = vld [vmem:[%s730_s1 + $0x30] sm:$0xff]   ;;  %v572_v30 = vld [vmem:[%s730_s1 + $0x38] sm:$0xff]   ;;  %v447_v39 = vcombine.high %v20_v38, %v20_v38  ;;  %v446_v41 = vcombine.low %v20_v38, %v20_v38  ;;  %v439_v44 = vld [vmem:[%s732_s2] ss:$0 sm:$0xff] }
   0xc   :  { %491 = vmatpush3.bf16.msra.mxu0 %v552_v10  ;;  %v569_v27 = vld [vmem:[%s730_s1 + $0xb0] sm:$0xff]   ;;  %v573_v31 = vld [vmem:[%s730_s1 + $0xb8] sm:$0xff]  }
   0xd   :  { %519 = vmatpush3.bf16.msra.mxu1 %v553_v11  ;;  %492 = vmatprep.subr.bf16.mxu0 %v554_v12  ;;  %v574_v32 = vld [vmem:[%s731_s0] ss:$16 sps:$4 sm:$0xff]   ;;  %v576_v33 = vld [vmem:[%s731_s0 + $0x4] ss:$16 sps:$4 sm:$0xff]   ;;  %v577_v34 = vld [vmem:[%s731_s0 + $0x8] ss:$16 sps:$4 sm:$0xff]  }
   0xe   :  { %520 = vmatprep.subr.bf16.mxu1 %v555_v13  ;;  %v579_v35 = vld [vmem:[%s731_s0 + $0xc] ss:$16 sps:$4 sm:$0xff]   ;;  %350 = vmatprep.mubr.bf16.mxu0 %v576_v33 }
   0xf   :  { %398 = vmatprep.mubr.bf16.mxu1 %v579_v35 }
  0x10   :  { %493 = vmatpush3.bf16.msra.mxu0 %v556_v14 }
  0x11   :  { %521 = vmatpush3.bf16.msra.mxu1 %v557_v15  ;;  %494 = vmatprep.subr.bf16.mxu0 %v558_v16 }
  0x12   :  { %522 = vmatprep.subr.bf16.mxu1 %v559_v17 }
  0x14   :  { %495 = vmatpush3.bf16.msra.mxu0 %v560_v18 }
  0x15   :  { %523 = vmatpush3.bf16.msra.mxu1 %v561_v19  ;;  %496 = vmatprep.subr.bf16.mxu0 %v562_v20 }
  0x16   :  { %524 = vmatprep.subr.bf16.mxu1 %v563_v21 }
  0x18   :  { %497 = vmatpush3.bf16.msra.mxu0 %v564_v22 }
  0x19   :  { %525 = vmatpush3.bf16.msra.mxu1 %v565_v23  ;;  %498 = vmatprep.subr.bf16.mxu0 %v566_v24 }
  0x1a   :  { %526 = vmatprep.subr.bf16.mxu1 %v567_v25 }
  0x1c   :  { %499 = vmatpush3.bf16.msra.mxu0 %v568_v26 }
  0x1d   :  { %527 = vmatpush3.bf16.msra.mxu1 %v569_v27  ;;  %500 = vmatprep.subr.bf16.mxu0 %v570_v28 }
  0x1e   :  { %528 = vmatprep.subr.bf16.mxu1 %v571_v29 }
  0x20   :  { %501 = vmatpush3.bf16.msra.mxu0 %v572_v30 }
  0x21   :  { %529 = vmatpush3.bf16.msra.mxu1 %v573_v31 }
  0x23   :  { %351 = vmatmul.mubr.bf16.vlgmr.msra.gmra.mrb[0].mxu0 %v574_v32 }
  0x24   :  { %399 = vmatmul.mubr.bf16.vlgmr.msra.gmra.mrb[0].mxu1 %v577_v34  ;;  %358 = vmatprep.mubr.bf16.mxu0 %v445_v37 }
  0x25   :  { %406 = vmatprep.mubr.bf16.mxu1 %v447_v39 }
  0x2b   :  { %359 = vmatmul.mubr.bf16.gmra.mrb[4].mxu0 %v444_v40 }
  0x2c   :  { %407 = vmatmul.mubr.bf16.gmra.mrb[4].mxu1 %v446_v41 }
  0xf6   :  { %v502_v42 = vpop.f32.mrb[0].mxu0 }
  0xf7   :  { %v530_v43 = vpop.f32.mrb[0].mxu1  ;;  %v503_v45 = vpop.f32.mrb[1].mxu0 }
  0xf8   :  { %v504_v46 = vadd.f32 %v503_v45, %v502_v42  ;;  %v531_v47 = vpop.f32.mrb[1].mxu1  ;;  %v505_v48 = vpop.f32.mrb[2].mxu0 }
  0xf9   :  { %v532_v49 = vadd.f32 %v531_v47, %v530_v43  ;;  %v533_v50 = vpop.f32.mrb[2].mxu1  ;;  %v506_v51 = vpop.f32.mrb[3].mxu0 }
  0xfa   :  { %v353_v52 = vadd.f32 %v504_v46, %v439_v44  ;;  %v507_v53 = vadd.f32 %v506_v51, %v505_v48  ;;  %v534_v54 = vpop.f32.mrb[3].mxu1 }
  0xfb   :  { %v535_v55 = vadd.f32 %v534_v54, %v533_v50 }
  0xfc   :  { %v401_v56 = vadd.f32 %v532_v49, %v353_v52  ;;  %v356_v57 = vadd.f32 %v507_v53, %v439_v44 }
  0xfe   :  { %v414_v58 = vmax.f32 %v401_v56, 0.0  ;;  %v404_v59 = vadd.f32 %v535_v55, %v356_v57  ;;  %v508_v60 = vpop.f32.mrb[4].mxu0 }
  0xff   :  { %v536_v61 = vpop.f32.mrb[4].mxu1  ;;  %v509_v62 = vpop.f32.mrb[5].mxu0 }
 0x100   :  { %v483_v63 = vpack.c.bf16 %v414_v58, %v414_v58  ;;  %v415_v0 = vmax.f32 %v404_v59, 0.0  ;;  %v510_v1 = vadd.f32 %v509_v62, %v508_v60  ;;  %v537_v2 = vpop.f32.mrb[5].mxu1  ;;  %v511_v3 = vpop.f32.mrb[6].mxu0 }
 0x101   :  { %v538_v4 = vadd.f32 %v537_v2, %v536_v61  ;;  %v539_v5 = vpop.f32.mrb[6].mxu1  ;;  %v512_v6 = vpop.f32.mrb[7].mxu0 }
 0x102   :  { %431 = vst.msk [vmem:[%s733_s3] sm:$0xf] %vm430_vm0, %v483_v63  ;;  %v484_v7 = vpack.c.bf16 %v415_v0, %v415_v0  ;;  %v361_v8 = vadd.f32 %v510_v1, %v439_v44  ;;  %v540_v9 = vpop.f32.mrb[7].mxu1 }
 0x104   :  { %432 = vst.msk [vmem:[%s733_s3 + $0x4] sm:$0xf] %vm430_vm0, %v484_v7  ;;  %v409_v10 = vadd.f32 %v538_v4, %v361_v8 }
 0x106   :  { %v416_v11 = vmax.f32 %v409_v10, 0.0 }
 0x108   :  { %v485_v12 = vpack.c.bf16 %v416_v11, %v416_v11 }
 0x10a   :  { %434 = vst.msk [vmem:[%s733_s3 + $0x8] sm:$0x1] %vm433_vm1, %v485_v12 }

// kernel: hybrid_dqn_device.6
= control target key start
LH: loop header
LB: loop body
LE: loop exit
PB: predicated region body
PF: predicated region fallthrough
CT: control target
= control target key end

     0   :  { %v626_v21 = vmov 1966171168   ;;  %v100_v23 = vlaneseq  ;;  %v627_v40 = vmov 0.0   ;;  %vm628_vm0 = vmmov 0   ;;  %s766_s1 = inlined_call_operand.vmem [shape: bf16[576,64], index: 1, kind: input, shape index: {}]   ;;  %s767_s0 = inlined_call_operand.vmem [shape: bf16[2,576], index: 0, kind: input, shape index: {}]   ;;  %s768_s2 = inlined_call_operand.vmem [shape: f32[1,64], index: 2, kind: input, shape index: {}]   ;;  %s769_s3 = inlined_call_operand.vmem [shape: bf16[2,64], index: 3, kind: output, shape index: {}]  }
   0x1   :  { %v589_v0 = vld [vmem:[%s766_s1 + $0x40] sm:$0xff]   ;;  %v593_v4 = vld [vmem:[%s766_s1 + $0x48] sm:$0xff]   ;;  %v597_v8 = vld [vmem:[%s766_s1 + $0x50] sm:$0xff]   ;;  %v98_v22 = vunpack.c.l.s4 %v626_v21  ;;  %vm355_vm1 = vcmask 523264   ;;  %vm481_vm2 = vcmask 516096  }
   0x2   :  { %v590_v1 = vld [vmem:[%s766_s1] sm:$0xff]   ;;  %525 = vmatprep.subr.bf16.mxu0 %v589_v0  ;;  %v594_v5 = vld [vmem:[%s766_s1 + $0x8] sm:$0xff]   ;;  %v598_v9 = vld [vmem:[%s766_s1 + $0x10] sm:$0xff]   ;;  %v101_v29 = vshrl.u32 %v100_v23, 7 }
   0x3   :  { %v591_v2 = vld [vmem:[%s766_s1 + $0xc0] sm:$0xff]   ;;  %526 = vmatpush3.bf16.msra.mxu0 %v590_v1  ;;  %v595_v6 = vld [vmem:[%s766_s1 + $0xc8] sm:$0xff]   ;;  %v599_v10 = vld [vmem:[%s766_s1 + $0xd0] sm:$0xff]   ;;  %v99_v28 = vunpack.c.0.s8 %v98_v22 }
   0x4   :  { %v592_v3 = vld [vmem:[%s766_s1 + $0x80] sm:$0xff]   ;;  %547 = vmatprep.subr.bf16.mxu1 %v591_v2  ;;  %527 = vmatprep.subr.bf16.mxu0 %v593_v4  ;;  %v596_v7 = vld [vmem:[%s766_s1 + $0x88] sm:$0xff]   ;;  %v600_v11 = vld [vmem:[%s766_s1 + $0x90] sm:$0xff]  }
   0x5   :  { %548 = vmatpush3.bf16.msra.mxu1 %v592_v3  ;;  %v601_v12 = vld [vmem:[%s766_s1 + $0x58] sm:$0xff]   ;;  %v605_v16 = vld [vmem:[%s766_s1 + $0x60] sm:$0xff]   ;;  %v609_v20 = vld [vmem:[%s766_s1 + $0x68] sm:$0xff]   ;;  %v102_v34 = vsub.s32 %v99_v28, %v101_v29 }
   0x6   :  { %549 = vmatprep.subr.bf16.mxu1 %v595_v6  ;;  %v602_v13 = vld [vmem:[%s766_s1 + $0x18] sm:$0xff]   ;;  %v606_v17 = vld [vmem:[%s766_s1 + $0x20] sm:$0xff]   ;;  %v610_v24 = vld [vmem:[%s766_s1 + $0x28] sm:$0xff]  }
   0x7   :  { %528 = vmatpush3.bf16.msra.mxu0 %v594_v5  ;;  %v603_v14 = vld [vmem:[%s766_s1 + $0xd8] sm:$0xff]   ;;  %v607_v18 = vld [vmem:[%s766_s1 + $0xe0] sm:$0xff]   ;;  %v611_v25 = vld [vmem:[%s766_s1 + $0xe8] sm:$0xff]  }
   0x8   :  { %529 = vmatprep.subr.bf16.mxu0 %v597_v8  ;;  %v604_v15 = vld [vmem:[%s766_s1 + $0x98] sm:$0xff]   ;;  %v608_v19 = vld [vmem:[%s766_s1 + $0xa0] sm:$0xff]   ;;  %v612_v26 = vld [vmem:[%s766_s1 + $0xa8] sm:$0xff]  }
   0x9   :  { %550 = vmatpush3.bf16.msra.mxu1 %v596_v7  ;;  %v613_v27 = vld [vmem:[%s766_s1 + $0x70] sm:$0xff]   ;;  %v617_v33 = vld [vmem:[%s766_s1 + $0x78] sm:$0xff]   ;;  %v15_v37 = vld [vmem:[%s767_s0] sm:$0x1f] }
   0xa   :  { %551 = vmatprep.subr.bf16.mxu1 %v599_v10  ;;  %v614_v30 = vld [vmem:[%s766_s1 + $0x30] sm:$0xff]   ;;  %v618_v35 = vld [vmem:[%s766_s1 + $0x38] sm:$0xff]   ;;  %v103_v38 = vrot.slane %v15_v37, %v102_v34  ;;  %v622_v44 = vld [vmem:[%s766_s1 + $0x100] sm:$0xff]   ;;  %v96_v48 = vcombine.high %v15_v37, %v15_v37 }
   0xb   :  { %530 = vmatpush3.bf16.msra.mxu0 %v598_v9  ;;  %v615_v31 = vld [vmem:[%s766_s1 + $0xf0] sm:$0xff]   ;;  %v619_v36 = vld [vmem:[%s766_s1 + $0xf8] sm:$0xff]   ;;  %v623_v47 = vld [vmem:[%s766_s1 + $0x108] sm:$0xff]  }
   0xc   :  { %531 = vmatprep.subr.bf16.mxu0 %v601_v12  ;;  %v616_v32 = vld [vmem:[%s766_s1 + $0xb0] sm:$0xff]   ;;  %v621_v39 = vld [vmem:[%s766_s1 + $0xb8] sm:$0xff]   ;;  %v111_v41 = vcombine.high %v103_v38, %v103_v38  ;;  %v118_v42 = vrot.slane %v103_v38, %v102_v34  ;;  %v110_v50 = vrot.slane %v96_v48, %v102_v34  ;;  %v487_v54 = vld [vmem:[%s768_s2] ss:$0 sm:$0xff] }
   0xd   :  { %552 = vmatpush3.bf16.msra.mxu1 %v600_v11  ;;  %v624_v49 = vld [vmem:[%s766_s1 + $0x110] sm:$0xff]   ;;  %v625_v51 = vld [vmem:[%s766_s1 + $0x118] sm:$0xff]  }
   0xe   :  { %553 = vmatprep.subr.bf16.mxu1 %v603_v14  ;;  %v132_v43 = vrot.slane %v111_v41, %v102_v34  ;;  %v133_v45 = vcombine.high %v118_v42, %v118_v42  ;;  %v125_v52 = vrot.slane %v110_v50, %v102_v34 }
   0xf   :  { %532 = vmatpush3.bf16.msra.mxu0 %v602_v13 }
  0x10   :  { %533 = vmatprep.subr.bf16.mxu0 %v605_v16  ;;  %391 = vmatprep.mubr.bf16.mxu0 %v132_v43  ;;  %v134_v46 = vcombine.high %v132_v43, %v132_v43 }
  0x11   :  { %554 = vmatpush3.bf16.msra.mxu1 %v604_v15 }
  0x12   :  { %555 = vmatprep.subr.bf16.mxu1 %v607_v18  ;;  %431 = vmatprep.mubr.bf16.mxu1 %v134_v46 }
  0x13   :  { %534 = vmatpush3.bf16.msra.mxu0 %v606_v17 }
  0x14   :  { %535 = vmatprep.subr.bf16.mxu0 %v609_v20 }
  0x15   :  { %556 = vmatpush3.bf16.msra.mxu1 %v608_v19 }
  0x16   :  { %557 = vmatprep.subr.bf16.mxu1 %v611_v25 }
  0x17   :  { %536 = vmatpush3.bf16.msra.mxu0 %v610_v24 }
  0x18   :  { %537 = vmatprep.subr.bf16.mxu0 %v613_v27 }
  0x19   :  { %558 = vmatpush3.bf16.msra.mxu1 %v612_v26 }
  0x1a   :  { %559 = vmatprep.subr.bf16.mxu1 %v615_v31 }
  0x1b   :  { %538 = vmatpush3.bf16.msra.mxu0 %v614_v30 }
  0x1c   :  { %539 = vmatprep.subr.bf16.mxu0 %v617_v33 }
  0x1d   :  { %560 = vmatpush3.bf16.msra.mxu1 %v616_v32 }
  0x1e   :  { %561 = vmatprep.subr.bf16.mxu1 %v619_v36 }
  0x1f   :  { %540 = vmatpush3.bf16.msra.mxu0 %v618_v35 }
  0x20   :  { %574 = vmatprep.subr.bf16.mxu0 %v627_v40 }
  0x21   :  { %562 = vmatpush3.bf16.msra.mxu1 %v621_v39 }
  0x22   :  { %392 = vmatmul.mubr.bf16.vlgmr.msra.gmra.mrb[0].mxu0 %v118_v42 }
  0x23   :  { %575 = vmatpush3.bf16.msra.mxu0 %v622_v44  ;;  %582 = vmatprep.mubr.msk.bf16.mxu0 %vm628_vm0, %v627_v40 }
  0x24   :  { %432 = vmatmul.mubr.bf16.vlgmr.msra.gmra.mrb[0].mxu1 %v133_v45  ;;  %576 = vmatprep.subr.bf16.mxu0 %v627_v40 }
  0x27   :  { %577 = vmatpush3.bf16.msra.mxu0 %v623_v47 }
  0x28   :  { %578 = vmatprep.subr.bf16.mxu0 %v627_v40 }
  0x2b   :  { %579 = vmatpush3.bf16.msra.mxu0 %v624_v49 }
  0x2c   :  { %580 = vmatprep.subr.bf16.mxu0 %v627_v40 }
  0x2f   :  { %581 = vmatpush3.bf16.msra.mxu0 %v625_v51 }
  0x32   :  { %583 = vmatmul.mubr.msk.bf16.vlgmr.msra.gmra.mrb[4].mxu0 %vm355_vm1, %v125_v52 }
  0xf5   :  { %v541_v53 = vpop.f32.mrb[0].mxu0 }
  0xf6   :  { %v542_v55 = vpop.f32.mrb[1].mxu0 }
  0xf7   :  { %v543_v56 = vadd.f32 %v542_v55, %v541_v53  ;;  %v544_v57 = vpop.f32.mrb[2].mxu0  ;;  %v563_v58 = vpop.f32.mrb[0].mxu1 }
  0xf8   :  { %v545_v59 = vpop.f32.mrb[3].mxu0  ;;  %v564_v60 = vpop.f32.mrb[1].mxu1 }
  0xf9   :  { %v394_v61 = vadd.f32 %v543_v56, %v487_v54  ;;  %v565_v62 = vadd.f32 %v564_v60, %v563_v58  ;;  %v566_v63 = vpop.f32.mrb[2].mxu1 }
  0xfa   :  { %v567_v0 = vpop.f32.mrb[3].mxu1 }
  0xfb   :  { %v434_v1 = vadd.f32 %v565_v62, %v394_v61 }
 0x105   :  { %v473_v2 = vpop.f32.mrb[4].mxu0 }
 0x106   :  { %v474_v3 = vadd.f32 %v473_v2, %v434_v1  ;;  %v584_v4 = vpop.f32.mrb[5].mxu0 }
 0x107   :  { %v476_v5 = vpop.f32.mrb[6].mxu0 }
 0x108   :  { %v479_v6 = vmax.f32 %v474_v3, 0.0  ;;  %v585_v7 = vpop.f32.mrb[7].mxu0 }
 0x10a   :  { %v480_v8 = vpack.c.bf16 %v479_v6, %v479_v6 }
 0x10c   :  { %482 = vst.msk [vmem:[%s769_s3] sm:$0x1] %vm481_vm2, %v480_v8 }

// kernel: hybrid_dqn_device.7
= control target key start
LH: loop header
LB: loop body
LE: loop exit
PB: predicated region body
PF: predicated region fallthrough
CT: control target
= control target key end

     0   :  { %v1433_v3 = vmov 0   ;;  %vm259_vm0 = vcmask 523264   ;;  %vm1133_vm4 = vcmask 1041408   ;;  %s1808_s1 = inlined_call_operand.vmem [shape: bf16[64,1024], index: 1, kind: input, shape index: {}]   ;;  %s1809_s3 = inlined_call_operand.vmem [shape: bf16[1024,128], index: 3, kind: input, shape index: {}]   ;;  %s1810_s0 = inlined_call_operand.vmem [shape: bf16[2,64], index: 0, kind: input, shape index: {}]   ;;  %s1811_s2 = inlined_call_operand.vmem [shape: f32[1,1024], index: 2, kind: input, shape index: {}]   ;;  %s1812_s4 = inlined_call_operand.vmem [shape: f32[1,128], index: 4, kind: input, shape index: {}]   ;;  %s1813_s5 = inlined_call_operand.vmem [shape: f32[2,128], index: 5, kind: input, shape index: {}]   ;;  %s1814_s6 = inlined_call_operand.vmem [shape: f32[2,128], index: 6, kind: output, shape index: {}]  }
   0x1   :  { %v25_v0 = vld [vmem:[%s1808_s1] sm:$0xff]  ;;  %v26_v2 = vld [vmem:[%s1808_s1 + $0x8] sm:$0xff]  ;;  %295 = vmatprep.mubr.bf16.mxu0 %v1433_v3  ;;  %336 = vmatprep.mubr.bf16.mxu1 %v1433_v3  ;;  %v27_v31 = vld [vmem:[%s1808_s1 + $0x10] sm:$0xff] }
   0x2   :  { %v29_v1 = vld [vmem:[%s1808_s1 + $0x20] sm:$0xff]  ;;  %v30_v5 = vld [vmem:[%s1808_s1 + $0x28] sm:$0xff]  ;;  %v31_v32 = vld [vmem:[%s1808_s1 + $0x30] sm:$0xff] }
   0x3   :  { %v1174_v4 = vcombine.high %v25_v0, %v29_v1  ;;  %v1173_v6 = vcombine.low %v25_v0, %v29_v1  ;;  %v33_v7 = vld [vmem:[%s1808_s1 + $0x40] sm:$0xff]  ;;  %v1176_v9 = vcombine.high %v26_v2, %v30_v5  ;;  %v1175_v10 = vcombine.low %v26_v2, %v30_v5  ;;  %v34_v12 = vld [vmem:[%s1808_s1 + $0x48] sm:$0xff]  ;;  %v28_v33 = vld [vmem:[%s1808_s1 + $0x18] sm:$0xff] }
   0x4   :  { %v37_v8 = vld [vmem:[%s1808_s1 + $0x60] sm:$0xff]  ;;  %v38_v13 = vld [vmem:[%s1808_s1 + $0x68] sm:$0xff]  ;;  %v32_v34 = vld [vmem:[%s1808_s1 + $0x38] sm:$0xff]  ;;  %v1178_v38 = vcombine.high %v27_v31, %v31_v32  ;;  %v1177_v44 = vcombine.low %v27_v31, %v31_v32 }
   0x5   :  { %v1182_v11 = vcombine.high %v33_v7, %v37_v8  ;;  %v41_v14 = vld [vmem:[%s1808_s1 + $0x80] sm:$0xff]  ;;  %263 = vmatprep.subr.bf16.mxu0 %v1174_v4  ;;  %v1184_v15 = vcombine.high %v34_v12, %v38_v13  ;;  %v42_v17 = vld [vmem:[%s1808_s1 + $0x88] sm:$0xff]  ;;  %304 = vmatprep.subr.bf16.mxu1 %v1176_v9  ;;  %v1181_v19 = vcombine.low %v33_v7, %v37_v8  ;;  %v35_v36 = vld [vmem:[%s1808_s1 + $0x50] sm:$0xff] }
   0x6   :  { %v45_v16 = vld [vmem:[%s1808_s1 + $0xa0] sm:$0xff]  ;;  %v46_v18 = vld [vmem:[%s1808_s1 + $0xa8] sm:$0xff]  ;;  %264 = vmatpush1.bf16.msra.mxu0 %v1173_v6  ;;  %305 = vmatpush1.bf16.msra.mxu1 %v1175_v10  ;;  %v1183_v20 = vcombine.low %v34_v12, %v38_v13  ;;  %v39_v39 = vld [vmem:[%s1808_s1 + $0x70] sm:$0xff]  ;;  %v1180_v41 = vcombine.high %v28_v33, %v32_v34  ;;  %v1179_v46 = vcombine.low %v28_v33, %v32_v34 }
   0x7   :  { %265 = vmatprep.subr.bf16.mxu0 %v1182_v11  ;;  %v1190_v21 = vcombine.high %v41_v14, %v45_v16  ;;  %306 = vmatprep.subr.bf16.mxu1 %v1184_v15  ;;  %v1192_v22 = vcombine.high %v42_v17, %v46_v18  ;;  %v49_v23 = vld [vmem:[%s1808_s1 + $0xc0] sm:$0xff]  ;;  %v50_v25 = vld [vmem:[%s1808_s1 + $0xc8] sm:$0xff]  ;;  %v1189_v27 = vcombine.low %v41_v14, %v45_v16  ;;  %v36_v42 = vld [vmem:[%s1808_s1 + $0x58] sm:$0xff] }
   0x8   :  { %v53_v24 = vld [vmem:[%s1808_s1 + $0xe0] sm:$0xff]  ;;  %v54_v26 = vld [vmem:[%s1808_s1 + $0xe8] sm:$0xff]  ;;  %v1191_v28 = vcombine.low %v42_v17, %v46_v18  ;;  %v40_v43 = vld [vmem:[%s1808_s1 + $0x78] sm:$0xff]  ;;  %v1186_v47 = vcombine.high %v35_v36, %v39_v39  ;;  %v1185_v52 = vcombine.low %v35_v36, %v39_v39  ;;  %v59_v36 = vlaneseq }
   0x9   :  { %v1198_v29 = vcombine.high %v49_v23, %v53_v24  ;;  %v1200_v30 = vcombine.high %v50_v25, %v54_v26  ;;  %v1197_v35 = vcombine.low %v49_v23, %v53_v24  ;;  %v1199_v37 = vcombine.low %v50_v25, %v54_v26  ;;  %v24_v40 = vld [vmem:[%s1810_s0] sm:$0x1]  ;;  %v43_v45 = vld [vmem:[%s1808_s1 + $0x90] sm:$0xff]  ;;  %v44_v50 = vld [vmem:[%s1808_s1 + $0x98] sm:$0xff] }
   0xa   :  { %266 = vmatpush1.bf16.msra.mxu0 %v1181_v19  ;;  %307 = vmatpush1.bf16.msra.mxu1 %v1183_v20  ;;  %v47_v48 = vld [vmem:[%s1808_s1 + $0xb0] sm:$0xff]  ;;  %v1188_v49 = vcombine.high %v36_v42, %v40_v43  ;;  %v48_v51 = vld [vmem:[%s1808_s1 + $0xb8] sm:$0xff]  ;;  %v1187_v54 = vcombine.low %v36_v42, %v40_v43  ;;  %v1363_v1 = vld [vmem:[%s1809_s3 + $0x40] sm:$0xff]  }
   0xb   :  { %267 = vmatprep.subr.bf16.mxu0 %v1190_v21  ;;  %308 = vmatprep.subr.bf16.mxu1 %v1192_v22  ;;  %v51_v53 = vld [vmem:[%s1808_s1 + $0xd0] sm:$0xff]  ;;  %v1194_v55 = vcombine.high %v43_v45, %v47_v48  ;;  %v1196_v57 = vcombine.high %v44_v50, %v48_v51  ;;  %v52_v58 = vld [vmem:[%s1808_s1 + $0xd8] sm:$0xff]  ;;  %v1193_v60 = vcombine.low %v43_v45, %v47_v48  ;;  %v1365_v4 = vld [vmem:[%s1809_s3] sm:$0xff]  }
   0xc   :  { %v55_v56 = vld [vmem:[%s1808_s1 + $0xf0] sm:$0xff]  ;;  %v56_v59 = vld [vmem:[%s1808_s1 + $0xf8] sm:$0xff]  ;;  %v1195_v61 = vcombine.low %v44_v50, %v48_v51  ;;  %v1366_v5 = vld [vmem:[%s1809_s3 + $0x80] sm:$0xff]  }
   0xd   :  { %v1202_v62 = vcombine.high %v51_v53, %v55_v56  ;;  %v1204_v63 = vcombine.high %v52_v58, %v56_v59  ;;  %v1201_v0 = vcombine.low %v51_v53, %v55_v56  ;;  %v1203_v2 = vcombine.low %v52_v58, %v56_v59  ;;  %v1367_v6 = vld [vmem:[%s1809_s3 + $0x48] sm:$0xff]   ;;  %v1371_v10 = vld [vmem:[%s1809_s3 + $0x50] sm:$0xff]   ;;  %v1375_v14 = vld [vmem:[%s1809_s3 + $0x58] sm:$0xff]  }
   0xe   :  { %268 = vmatpush1.bf16.msra.mxu0 %v1189_v27  ;;  %309 = vmatpush1.bf16.msra.mxu1 %v1191_v28  ;;  %v1368_v7 = vld [vmem:[%s1809_s3 + $0xc8] sm:$0xff]   ;;  %v1372_v11 = vld [vmem:[%s1809_s3 + $0xd0] sm:$0xff]   ;;  %v1376_v15 = vld [vmem:[%s1809_s3 + $0xd8] sm:$0xff]  }
   0xf   :  { %269 = vmatprep.subr.bf16.mxu0 %v1198_v29  ;;  %310 = vmatprep.subr.bf16.mxu1 %v1200_v30  ;;  %v1369_v8 = vld [vmem:[%s1809_s3 + $0x8] sm:$0xff]   ;;  %v1373_v12 = vld [vmem:[%s1809_s3 + $0x10] sm:$0xff]   ;;  %v1377_v16 = vld [vmem:[%s1809_s3 + $0x18] sm:$0xff]  }
  0x10   :  { %v1370_v9 = vld [vmem:[%s1809_s3 + $0x88] sm:$0xff]   ;;  %v1374_v13 = vld [vmem:[%s1809_s3 + $0x90] sm:$0xff]   ;;  %v1378_v17 = vld [vmem:[%s1809_s3 + $0x98] sm:$0xff]  }
  0x11   :  { %v1379_v18 = vld [vmem:[%s1809_s3 + $0x60] sm:$0xff]   ;;  %v1383_v22 = vld [vmem:[%s1809_s3 + $0x68] sm:$0xff]   ;;  %v1387_v26 = vld [vmem:[%s1809_s3 + $0x70] sm:$0xff]  }
  0x12   :  { %270 = vmatpush1.bf16.msra.mxu0 %v1197_v35  ;;  %311 = vmatpush1.bf16.msra.mxu1 %v1199_v37  ;;  %v1380_v19 = vld [vmem:[%s1809_s3 + $0xe0] sm:$0xff]   ;;  %v1384_v23 = vld [vmem:[%s1809_s3 + $0xe8] sm:$0xff]   ;;  %v1388_v27 = vld [vmem:[%s1809_s3 + $0xf0] sm:$0xff]   ;;  %v1679_v37 = vshrl.u32 %v59_v36, 7 }
  0x13   :  { %345 = vmatprep.subr.bf16.mxu0 %v1178_v38  ;;  %386 = vmatprep.subr.bf16.mxu1 %v1180_v41  ;;  %v1381_v20 = vld [vmem:[%s1809_s3 + $0x20] sm:$0xff]   ;;  %v1385_v24 = vld [vmem:[%s1809_s3 + $0x28] sm:$0xff]   ;;  %v1389_v28 = vld [vmem:[%s1809_s3 + $0x30] sm:$0xff]  }
  0x14   :  { %v1382_v21 = vld [vmem:[%s1809_s3 + $0xa0] sm:$0xff]   ;;  %v1386_v25 = vld [vmem:[%s1809_s3 + $0xa8] sm:$0xff]   ;;  %v1390_v29 = vld [vmem:[%s1809_s3 + $0xb0] sm:$0xff]   ;;  %v61_v38 = vsub.s32 0, %v1679_v37  ;;  %v65_v41 = vsub.s32 1, %v1679_v37  ;;  %v73_v42 = vsub.s32 3, %v1679_v37 }
  0x15   :  { %1205 = vmatmul.mubr.msk.bf16.vlgmr.msra.gmra.mrb[0].mxu0 %vm259_vm0, %v24_v40  ;;  %1206 = vmatmul.mubr.msk.bf16.vlgmr.msra.gmra.mrb[0].mxu1 %vm259_vm0, %v24_v40  ;;  %v1391_v30 = vld [vmem:[%s1809_s3 + $0x78] sm:$0xff]   ;;  %v1395_v34 = vld [vmem:[%s1809_s3 + $0x140] sm:$0xff]  }
  0x16   :  { %346 = vmatpush1.bf16.msra.mxu0 %v1177_v44  ;;  %387 = vmatpush1.bf16.msra.mxu1 %v1179_v46  ;;  %v1392_v31 = vld [vmem:[%s1809_s3 + $0xf8] sm:$0xff]   ;;  %v1396_v35 = vld [vmem:[%s1809_s3 + $0x1c0] sm:$0xff]  }
  0x17   :  { %347 = vmatprep.subr.bf16.mxu0 %v1186_v47  ;;  %388 = vmatprep.subr.bf16.mxu1 %v1188_v49  ;;  %v1393_v32 = vld [vmem:[%s1809_s3 + $0x38] sm:$0xff]   ;;  %v1685_v39 = vld [vmem:[%s1811_s2] sm:$0xff] }
  0x18   :  { %377 = vmatprep.mubr.bf16.mxu0 %v1433_v3  ;;  %418 = vmatprep.mubr.bf16.mxu1 %v1433_v3  ;;  %v1364_v3 = vld [vmem:[%s1809_s3 + $0xc0] sm:$0xff]   ;;  %v1394_v33 = vld [vmem:[%s1809_s3 + $0xb8] sm:$0xff]   ;;  %v62_v43 = vrot.slane %v1685_v39, %v61_v38  ;;  %v66_v45 = vrot.slane %v1685_v39, %v65_v41  ;;  %v74_v46 = vrot.slane %v1685_v39, %v73_v42  ;;  %v77_v42 = vsub.s32 4, %v1679_v37 }
  0x19   :  { %v1414_v41 = vld [vmem:[%s1809_s3 + $0x1a0] sm:$0xff]  }
  0x1a   :  { %348 = vmatpush1.bf16.msra.mxu0 %v1185_v52  ;;  %389 = vmatpush1.bf16.msra.mxu1 %v1187_v54 }
  0x1b   :  { %349 = vmatprep.subr.bf16.mxu0 %v1194_v55  ;;  %390 = vmatprep.subr.bf16.mxu1 %v1196_v57 }
  0x1e   :  { %350 = vmatpush1.bf16.msra.mxu0 %v1193_v60  ;;  %391 = vmatpush1.bf16.msra.mxu1 %v1195_v61 }
  0x1f   :  { %351 = vmatprep.subr.bf16.mxu0 %v1202_v62  ;;  %392 = vmatprep.subr.bf16.mxu1 %v1204_v63 }
  0x22   :  { %352 = vmatpush1.bf16.msra.mxu0 %v1201_v0  ;;  %393 = vmatpush1.bf16.msra.mxu1 %v1203_v2 }
  0x23   :  { %1274 = vmatprep.subr.bf16.mxu0 %v1363_v1  ;;  %1296 = vmatprep.subr.bf16.mxu1 %v1364_v3  ;;  %v1397_v1 = vld [vmem:[%s1809_s3 + $0x100] sm:$0xff]  }
  0x25   :  { %1207 = vmatmul.mubr.msk.bf16.vlgmr.msra.gmra.mrb[4].mxu0 %vm259_vm0, %v24_v40  ;;  %1208 = vmatmul.mubr.msk.bf16.vlgmr.msra.gmra.mrb[4].mxu1 %vm259_vm0, %v24_v40  ;;  %v69_v40 = vsub.s32 2, %v1679_v37 }
  0x26   :  { %1275 = vmatpush3.bf16.msra.mxu0 %v1365_v4  ;;  %1297 = vmatpush3.bf16.msra.mxu1 %v1366_v5  ;;  %v1398_v4 = vld [vmem:[%s1809_s3 + $0x180] sm:$0xff]   ;;  %v1399_v5 = vld [vmem:[%s1809_s3 + $0x148] sm:$0xff]  }
  0x27   :  { %1276 = vmatprep.subr.bf16.mxu0 %v1367_v6  ;;  %1298 = vmatprep.subr.bf16.mxu1 %v1368_v7  ;;  %v70_v44 = vrot.slane %v1685_v39, %v69_v40  ;;  %v1400_v6 = vld [vmem:[%s1809_s3 + $0x1c8] sm:$0xff]   ;;  %v85_v40 = vsub.s32 6, %v1679_v37 }
  0x28   :  { %v1401_v7 = vld [vmem:[%s1809_s3 + $0x108] sm:$0xff]  }
  0x2a   :  { %1277 = vmatpush3.bf16.msra.mxu0 %v1369_v8  ;;  %1299 = vmatpush3.bf16.msra.mxu1 %v1370_v9  ;;  %v81_v8 = vsub.s32 5, %v1679_v37  ;;  %v1402_v9 = vld [vmem:[%s1809_s3 + $0x188] sm:$0xff]  }
  0x2b   :  { %1278 = vmatprep.subr.bf16.mxu0 %v1371_v10  ;;  %1300 = vmatprep.subr.bf16.mxu1 %v1372_v11  ;;  %v1403_v10 = vld [vmem:[%s1809_s3 + $0x150] sm:$0xff]   ;;  %v89_v11 = vsub.s32 7, %v1679_v37  ;;  %v78_v37 = vrot.slane %v1685_v39, %v77_v42 }
  0x2e   :  { %1279 = vmatpush3.bf16.msra.mxu0 %v1373_v12  ;;  %1301 = vmatpush3.bf16.msra.mxu1 %v1374_v13  ;;  %v1404_v12 = vld [vmem:[%s1809_s3 + $0x1d0] sm:$0xff]  }
  0x2f   :  { %1280 = vmatprep.subr.bf16.mxu0 %v1375_v14  ;;  %1302 = vmatprep.subr.bf16.mxu1 %v1376_v15  ;;  %v1405_v13 = vld [vmem:[%s1809_s3 + $0x110] sm:$0xff]   ;;  %v82_v14 = vrot.slane %v1685_v39, %v81_v8 }
  0x30   :  { %v1406_v15 = vld [vmem:[%s1809_s3 + $0x190] sm:$0xff]  }
  0x32   :  { %1281 = vmatpush3.bf16.msra.mxu0 %v1377_v16  ;;  %1303 = vmatpush3.bf16.msra.mxu1 %v1378_v17  ;;  %v1407_v16 = vld [vmem:[%s1809_s3 + $0x158] sm:$0xff]   ;;  %v90_v17 = vrot.slane %v1685_v39, %v89_v11  ;;  %v1123_v11 = vand.u32 127, %v59_v36 }
  0x33   :  { %1282 = vmatprep.subr.bf16.mxu0 %v1379_v18  ;;  %1304 = vmatprep.subr.bf16.mxu1 %v1380_v19  ;;  %v1408_v18 = vld [vmem:[%s1809_s3 + $0x1d8] sm:$0xff]  }
  0x34   :  { %vm1124_vm1 = vcmp.lt.s32.totalorder %v1123_v11, 6  ;;  %vm1125_vm7 = vcmp.ge.s32.totalorder %v1123_v11, 6  ;;  %vm1126_vm8 = vcmp.lt.s32.totalorder %v1123_v11, 8  ;;  %vm1128_vm9 = vcmp.eq.s32.totalorder %v1123_v11, 8 }
  0x35   :  { %vm1127_vm10 = vmand %vm1125_vm7, %vm1126_vm8 }
  0x36   :  { %1283 = vmatpush3.bf16.msra.mxu0 %v1381_v20  ;;  %1305 = vmatpush3.bf16.msra.mxu1 %v1382_v21 }
  0x37   :  { %1284 = vmatprep.subr.bf16.mxu0 %v1383_v22  ;;  %1306 = vmatprep.subr.bf16.mxu1 %v1384_v23  ;;  %v1409_v22 = vld [vmem:[%s1809_s3 + $0x118] sm:$0xff]  }
  0x3a   :  { %1285 = vmatpush3.bf16.msra.mxu0 %v1385_v24  ;;  %1307 = vmatpush3.bf16.msra.mxu1 %v1386_v25 }
  0x3b   :  { %1286 = vmatprep.subr.bf16.mxu0 %v1387_v26  ;;  %1308 = vmatprep.subr.bf16.mxu1 %v1388_v27  ;;  %v1410_v26 = vld [vmem:[%s1809_s3 + $0x198] sm:$0xff]   ;;  %v1411_v27 = vld [vmem:[%s1809_s3 + $0x160] sm:$0xff]  }
  0x3e   :  { %1287 = vmatpush3.bf16.msra.mxu0 %v1389_v28  ;;  %1309 = vmatpush3.bf16.msra.mxu1 %v1390_v29 }
  0x3f   :  { %1288 = vmatprep.subr.bf16.mxu0 %v1391_v30  ;;  %1310 = vmatprep.subr.bf16.mxu1 %v1392_v31  ;;  %v1412_v31 = vld [vmem:[%s1809_s3 + $0x1e0] sm:$0xff]  }
  0x42   :  { %1289 = vmatpush3.bf16.msra.mxu0 %v1393_v32  ;;  %1311 = vmatpush3.bf16.msra.mxu1 %v1394_v33 }
  0x43   :  { %1318 = vmatprep.subr.bf16.mxu0 %v1395_v34  ;;  %1340 = vmatprep.subr.bf16.mxu1 %v1396_v35  ;;  %v1413_v35 = vld [vmem:[%s1809_s3 + $0x120] sm:$0xff]  }
  0xe8   :  { %v297_v47 = vpop.f32.mrb[0].mxu0  ;;  %v338_v49 = vpop.f32.mrb[0].mxu1 }
  0xe9   :  { %v298_v48 = vadd.f32 %v297_v47, %v62_v43  ;;  %v299_v50 = vpop.f32.mrb[1].mxu0  ;;  %v339_v51 = vadd.f32 %v338_v49, %v70_v44  ;;  %v340_v53 = vpop.f32.mrb[1].mxu1  ;;  %v1415_v43 = vld [vmem:[%s1809_s3 + $0x168] sm:$0xff]   ;;  %v86_v47 = vrot.slane %v1685_v39, %v85_v40  ;;  %v1419_v49 = vld [vmem:[%s1809_s3 + $0x170] sm:$0xff]  }
  0xea   :  { %v300_v52 = vadd.f32 %v299_v50, %v66_v45  ;;  %v301_v54 = vpop.f32.mrb[2].mxu0  ;;  %v341_v56 = vadd.f32 %v340_v53, %v74_v46  ;;  %v342_v57 = vpop.f32.mrb[2].mxu1  ;;  %v1416_v45 = vld [vmem:[%s1809_s3 + $0x1e8] sm:$0xff]   ;;  %v1420_v50 = vld [vmem:[%s1809_s3 + $0x1f0] sm:$0xff]  }
  0xeb   :  { %v427_v55 = vmax.f32 %v298_v48, 0.0  ;;  %v302_v58 = vpop.f32.mrb[3].mxu0  ;;  %v429_v59 = vmax.f32 %v339_v51, 0.0  ;;  %v343_v61 = vpop.f32.mrb[3].mxu1  ;;  %v1417_v46 = vld [vmem:[%s1809_s3 + $0x128] sm:$0xff]   ;;  %v1421_v39 = vld [vmem:[%s1809_s3 + $0x130] sm:$0xff]  }
  0xec   :  { %v428_v60 = vmax.f32 %v300_v52, 0.0  ;;  %v430_v62 = vmax.f32 %v341_v56, 0.0  ;;  %v1418_v48 = vld [vmem:[%s1809_s3 + $0x1a8] sm:$0xff]   ;;  %v1422_v53 = vld [vmem:[%s1809_s3 + $0x1b0] sm:$0xff]   ;;  %v1423_v54 = vld [vmem:[%s1809_s3 + $0x178] sm:$0xff]  }
  0xed   :  { %v437_v63 = vpack.c.bf16 %v429_v59, %v429_v59  ;;  %v435_v2 = vpack.c.bf16 %v427_v55, %v427_v55  ;;  %v1424_v55 = vld [vmem:[%s1809_s3 + $0x1f8] sm:$0xff]  }
  0xee   :  { %v436_v0 = vpack.c.bf16 %v428_v60, %v428_v60  ;;  %v438_v3 = vpack.c.bf16 %v430_v62, %v430_v62  ;;  %v1425_v57 = vld [vmem:[%s1809_s3 + $0x138] sm:$0xff]  }
  0xef   :  { %v1426_v59 = vld [vmem:[%s1809_s3 + $0x1b8] sm:$0xff]  }
  0xf0   :  { %994 = vmatprep.mubr.bf16.mxu0 %v436_v0  ;;  %1034 = vmatprep.mubr.bf16.mxu1 %v438_v3  ;;  %v1209_v0 = vld [vmem:[%s1812_s4] ss:$0 sm:$0xff] }
  0xf1   :  { %995 = vmatmul.mubr.bf16.vlgmr.msra.gmra.mrb[8].mxu0 %v435_v2  ;;  %1035 = vmatmul.mubr.bf16.vlgmr.msra.gmra.mrb[8].mxu1 %v437_v63 }
  0xf2   :  { %1319 = vmatpush3.bf16.msra.mxu0 %v1397_v1  ;;  %1341 = vmatpush3.bf16.msra.mxu1 %v1398_v4 }
  0xf3   :  { %1320 = vmatprep.subr.bf16.mxu0 %v1399_v5  ;;  %1342 = vmatprep.subr.bf16.mxu1 %v1400_v6 }
  0xf6   :  { %1321 = vmatpush3.bf16.msra.mxu0 %v1401_v7  ;;  %1343 = vmatpush3.bf16.msra.mxu1 %v1402_v9 }
  0xf7   :  { %1322 = vmatprep.subr.bf16.mxu0 %v1403_v10  ;;  %1344 = vmatprep.subr.bf16.mxu1 %v1404_v12  ;;  %v1129_v12 = vld [vmem:[%s1813_s5] sm:$0x3] }
  0xf8   :  { %v379_v19 = vpop.f32.mrb[4].mxu0  ;;  %v420_v21 = vpop.f32.mrb[4].mxu1  ;;  %vm1130_vm2 = vcmp.gt.f32.partialorder %v1129_v12, 0.5 }
  0xf9   :  { %v381_v20 = vpop.f32.mrb[5].mxu0  ;;  %v422_v25 = vpop.f32.mrb[5].mxu1  ;;  %v421_v51 = vadd.f32 %v420_v21, %v86_v47  ;;  %v380_v52 = vadd.f32 %v379_v19, %v78_v37  ;;  %vm1131_vm3 = vmand %vm1124_vm1, %vm1130_vm2 }
  0xfa   :  { %1323 = vmatpush3.bf16.msra.mxu0 %v1405_v13  ;;  %v382_v23 = vadd.f32 %v381_v20, %v82_v14  ;;  %v383_v24 = vpop.f32.mrb[6].mxu0  ;;  %1345 = vmatpush3.bf16.msra.mxu1 %v1406_v15  ;;  %v423_v29 = vadd.f32 %v422_v25, %v90_v17  ;;  %v424_v30 = vpop.f32.mrb[6].mxu1 }
  0xfb   :  { %1324 = vmatprep.subr.bf16.mxu0 %v1407_v16  ;;  %v384_v28 = vpop.f32.mrb[7].mxu0  ;;  %1346 = vmatprep.subr.bf16.mxu1 %v1408_v18  ;;  %v425_v33 = vpop.f32.mrb[7].mxu1  ;;  %v433_v56 = vmax.f32 %v421_v51, 0.0  ;;  %v431_v58 = vmax.f32 %v380_v52, 0.0 }
  0xfc   :  { %v432_v32 = vmax.f32 %v382_v23, 0.0  ;;  %v434_v34 = vmax.f32 %v423_v29, 0.0 }
  0xfd   :  { %v441_v60 = vpack.c.bf16 %v433_v56, %v433_v56  ;;  %v439_v61 = vpack.c.bf16 %v431_v58, %v431_v58 }
  0xfe   :  { %1325 = vmatpush3.bf16.msra.mxu0 %v1409_v22  ;;  %v440_v38 = vpack.c.bf16 %v432_v32, %v432_v32  ;;  %1347 = vmatpush3.bf16.msra.mxu1 %v1410_v26  ;;  %v442_v44 = vpack.c.bf16 %v434_v34, %v434_v34 }
  0xff   :  { %1326 = vmatprep.subr.bf16.mxu0 %v1411_v27  ;;  %1348 = vmatprep.subr.bf16.mxu1 %v1412_v31 }
 0x100   :  { %1074 = vmatprep.mubr.bf16.mxu0 %v440_v38  ;;  %1114 = vmatprep.mubr.bf16.mxu1 %v442_v44 }
 0x102   :  { %1327 = vmatpush3.bf16.msra.mxu0 %v1413_v35  ;;  %1349 = vmatpush3.bf16.msra.mxu1 %v1414_v41 }
 0x103   :  { %1328 = vmatprep.subr.bf16.mxu0 %v1415_v43  ;;  %1350 = vmatprep.subr.bf16.mxu1 %v1416_v45 }
 0x106   :  { %1329 = vmatpush3.bf16.msra.mxu0 %v1417_v46  ;;  %1351 = vmatpush3.bf16.msra.mxu1 %v1418_v48 }
 0x107   :  { %1330 = vmatprep.subr.bf16.mxu0 %v1419_v49  ;;  %1352 = vmatprep.subr.bf16.mxu1 %v1420_v50 }
 0x10a   :  { %1331 = vmatpush3.bf16.msra.mxu0 %v1421_v39  ;;  %1353 = vmatpush3.bf16.msra.mxu1 %v1422_v53 }
 0x10b   :  { %1332 = vmatprep.subr.bf16.mxu0 %v1423_v54  ;;  %1354 = vmatprep.subr.bf16.mxu1 %v1424_v55 }
 0x10e   :  { %1333 = vmatpush3.bf16.msra.mxu0 %v1425_v57  ;;  %1355 = vmatpush3.bf16.msra.mxu1 %v1426_v59 }
 0x111   :  { %1075 = vmatmul.mubr.bf16.vlgmr.msra.gmra.mrb[12].mxu0 %v439_v61  ;;  %1115 = vmatmul.mubr.bf16.vlgmr.msra.gmra.mrb[12].mxu1 %v441_v60 }
 0x1c4   :  { %v1290_v62 = vpop.f32.mrb[8].mxu0  ;;  %v1312_v63 = vpop.f32.mrb[8].mxu1 }
 0x1c5   :  { %v1291_v1 = vpop.f32.mrb[9].mxu0  ;;  %v1313_v3 = vpop.f32.mrb[9].mxu1 }
 0x1c6   :  { %v1292_v2 = vadd.f32 %v1291_v1, %v1290_v62  ;;  %v1293_v4 = vpop.f32.mrb[10].mxu0  ;;  %v1314_v5 = vadd.f32 %v1313_v3, %v1312_v63  ;;  %v1315_v6 = vpop.f32.mrb[10].mxu1 }
 0x1c7   :  { %v1294_v7 = vpop.f32.mrb[11].mxu0  ;;  %v1316_v9 = vpop.f32.mrb[11].mxu1 }
 0x1c8   :  { %v997_v8 = vadd.f32 %v1292_v2, %v1209_v0 }
 0x1ca   :  { %v1037_v10 = vadd.f32 %v1314_v5, %v997_v8 }
 0x1e4   :  { %v1334_v13 = vpop.f32.mrb[12].mxu0  ;;  %v1356_v14 = vpop.f32.mrb[12].mxu1 }
 0x1e5   :  { %v1335_v15 = vpop.f32.mrb[13].mxu0  ;;  %v1357_v17 = vpop.f32.mrb[13].mxu1 }
 0x1e6   :  { %v1336_v16 = vadd.f32 %v1335_v15, %v1334_v13  ;;  %v1337_v18 = vpop.f32.mrb[14].mxu0  ;;  %v1358_v19 = vadd.f32 %v1357_v17, %v1356_v14  ;;  %v1359_v20 = vpop.f32.mrb[14].mxu1 }
 0x1e7   :  { %v1338_v21 = vpop.f32.mrb[15].mxu0  ;;  %v1360_v23 = vpop.f32.mrb[15].mxu1 }
 0x1e8   :  { %v1077_v22 = vadd.f32 %v1336_v16, %v1037_v10 }
 0x1ea   :  { %v1117_v36 = vadd.f32 %v1358_v19, %v1077_v22 }
 0x1ec   :  { %v1132_v24 = vsel %vm1131_vm3, %v1117_v36, -1e+09 }
 0x1ed   :  { %v1134_v25 = vsel %vm1133_vm4, %v1132_v24, -inf }
 0x1ee   :  { %1135 = vmax.xlane.f32.xlu0 %v1134_v25 }
 0x27b   :  { %v1136_v26 = vpop.xlane.xlu0 %1135 }
 0x27c   :  { %v1137_v27 = vsub.f32 %v1132_v24, %v1136_v26  ;;  %vm1146_vm5 = vcmp.ge.f32.partialorder %v1132_v24, %v1136_v26 }
 0x27d   :  { %v1147_v28 = vsel %vm1146_vm5, %v1123_v11, 128 }
 0x27e   :  { %v1138_v29 = vmul.f32 1.442695, %v1137_v27  ;;  %v1148_v30 = vsel %vm1133_vm4, %v1147_v28, 2147483647 }
 0x27f   :  { %v1150_v31 = vshra.s32 %v1148_v30, 16  ;;  %v1149_v38 = vand.u32 65535, %v1148_v30 }
 0x280   :  { %1427 = vpow2.f32 %v1138_v29 }
 0x281   :  { %v1152_v32 = vcvt.s32.f32 %v1150_v31  ;;  %v1151_v41 = vcvt.s32.f32 %v1149_v38 }
 0x283   :  { %1153 = vmin.xlane.f32.xlu0 %v1152_v32 }
 0x28a   :  { %v1428_v33 = vpop.eup %1427 }
 0x28b   :  { %v1140_v34 = vsel %vm1124_vm1, %v1428_v33, 0.0 }
 0x28c   :  { %v1141_v35 = vsel %vm1133_vm4, %v1140_v34, 0.0 }
 0x28d   :  { %1142 = vadd.xlane.f32.xlu1 %v1141_v35 }
 0x310   :  { %v1154_v40 = vpop.xlane.xlu0 %1153 }
 0x311   :  { %vm1155_vm6 = vcmp.eq.f32.partialorder %v1152_v32, %v1154_v40  ;;  %v1160_v44 = vcvt.f32.s32 %v1154_v40 }
 0x312   :  { %v1156_v42 = vsel %vm1155_vm6, %v1151_v41, inf }
 0x313   :  { %1157 = vmin.xlane.f32.xlu1 %v1156_v42  ;;  %v1161_v46 = vshll.u32 %v1160_v44, 16 }
 0x31a   :  { %v1143_v43 = vpop.xlane.xlu1 %1142 }
 0x31b   :  { %1429 = vrcp.f32 %v1143_v43 }
 0x31c   :  { %1431 = vtanh.f32 %v1117_v36 }
 0x325   :  { %v1430_v48 = vpop.eup %1429 }
 0x326   :  { %v1432_v50 = vpop.eup %1431  ;;  %v1145_v51 = vmul.f32 %v1430_v48, %v1140_v34 }
 0x3a0   :  { %v1158_v45 = vpop.xlane.xlu1 %1157 }
 0x3a1   :  { %v1159_v47 = vcvt.f32.s32 %v1158_v45 }
 0x3a3   :  { %v1162_v37 = vadd.s32 %v1161_v46, %v1159_v47 }
 0x3a5   :  { %v1163_v49 = vcvt.s32.f32 %v1162_v37 }
 0x3a7   :  { %v1165_v39 = vsel %vm1128_vm9, %v1163_v49, 0.0 }
 0x3a8   :  { %v1166_v52 = vsel %vm1127_vm10, %v1432_v50, %v1165_v39 }
 0x3a9   :  { %v1167_v53 = vsel %vm1124_vm1, %v1145_v51, %v1166_v52 }
 0x3aa   :  { %1168 = vst [vmem:[%s1814_s6] sm:$0x3] %v1167_v53 }

</bundles_post_ra>
